<compile_context>
chip_gen: v5e
topology: v5e:2x2
jax: 0.10.0
libtpu: 0.0.40
codegen_flags: <defaults>
</compile_context>

<pallas_src>
import functools

import jax
import jax.numpy as jnp
from jax import lax
from jax.experimental import pallas as pl
from jax.experimental.pallas import tpu as pltpu

NEG_SLOPE = 0.2                       # GATv2Conv default negative_slope
_LIN_COEF = 0.5 * (1.0 + NEG_SLOPE)   # 0.6  : leaky_relu(v) = 0.6*v + 0.4*|v|
_ABS_COEF = 0.5 * (1.0 - NEG_SLOPE)   # 0.4


# ----------------------------- kernel-side math ----------------------------- #

def _gatv2(x, mask_bias, w, b, att_bd, att_bd_t, att_abs_ref, bias,
           *, heads, out_ch, concat, approx_recip):
    """One GATv2 layer on VMEM-resident values.

    x           [N, F]       node features
    mask_bias   [N, N]       additive mask: 0 on edges (incl. self loops), -1e30 elsewhere
    w           [F, 2*H*C]   packed [W_l | W_r]   (one MXU push covers both projections)
    b           [1, 2*H*C]   packed [b_l | b_r]
    att_bd      [H*C, H]     block-diag att, pre-scaled by 0.6 (linear lrelu part)
    att_bd_t    [H, H*C]     its transpose (transposed linear term comes off the MXU)
    att_abs_ref SMEM [H*C]   flat att, pre-scaled by 0.4 (|.| lrelu part, scalar reads)
    bias        [1, H*C] if concat else [1, C]
    """
    hc = heads * out_ch
    proj = jnp.dot(x, w, preferred_element_type=jnp.float32) + b      # [N, 2HC]  (MXU)
    xl = proj[:, :hc]          # source side (x_j)
    xr = proj[:, hc:]          # target side (x_i)
    xl_t = xl.T                # ONE XLU transpose per layer (was one per head)

    # Rank-1 "linear" part of the leaky_relu, hoisted out of the O(N^2*C) loop:
    #   lin_r[i, h]   = 0.6 * sum_c att[h,c] * xr[i, h*C+c]
    #   lin_l_t[h, j] = 0.6 * sum_c att[h,c] * xl[j, h*C+c]
    lin_r = jnp.dot(xr, att_bd, preferred_element_type=jnp.float32)        # [N, H]
    lin_l_t = jnp.dot(att_bd_t, xl_t, preferred_element_type=jnp.float32)  # [H, N]

    head_outs = []
    for h in range(heads):              # static unroll (H, C tiny at this size)
        base = h * out_ch
        # start from the hoisted linear term: one broadcast add per element
        acc = lin_r[:, h:h + 1] + lin_l_t[h:h + 1, :]                      # [N_tgt, N_src]
        # per-channel 0.4*att_c*|x_i + x_j| accumulation on lane-dense [N,N] slabs
        for c in range(out_ch):
            s = xr[:, base + c:base + c + 1] + xl_t[base + c:base + c + 1, :]
            acc = acc + att_abs_ref[base + c] * jnp.abs(s)
        e = acc + mask_bias                           # additive mask (no cmp/select)
        e = e - jnp.max(e, axis=1, keepdims=True)     # stable softmax over sources (XLU)
        p = jnp.exp(e)                                # masked entries underflow to 0 (EUP)
        den = jnp.sum(p, axis=1, keepdims=True)
        if approx_recip:
            inv = pl.reciprocal(den, approx=True)     # EUP; ~1e-4 rel err, fine for fwd
        else:
            inv = 1.0 / den                           # exact fallback for tight validation
        alpha = p * inv                               # every row has a self loop
        head_outs.append(jnp.dot(alpha, xl[:, base:base + out_ch],
                                 preferred_element_type=jnp.float32))      # [N, C]  (MXU)

    if concat:
        out = jnp.concatenate(head_outs, axis=1)      # [N, H*C]
    else:
        out = head_outs[0]
        for t in head_outs[1:]:
            out = out + t
        out = out * (1.0 / heads)                     # mean over heads
    return out + bias


def _gatae_kernel(x_ref, adj_ref,
                  w1_ref, b1_ref, att1_bd_ref, att1_bdt_ref, bias1_ref,
                  w2_ref, b2_ref, att2_bd_ref, att2_bdt_ref, bias2_ref,
                  att1_abs_ref, att2_abs_ref,
                  a_ref, z_ref,
                  *, heads1, ch1, ch2, approx_recip):
    x = x_ref[...]
    # additive adjacency mask built once (bf16 input -> f32), shared by both layers
    mask_bias = (adj_ref[...].astype(jnp.float32) - 1.0) * jnp.float32(1e30)

    h1 = _gatv2(x, mask_bias, w1_ref[...], b1_ref[...],
                att1_bd_ref[...], att1_bdt_ref[...], att1_abs_ref, bias1_ref[...],
                heads=heads1, out_ch=ch1, concat=True, approx_recip=approx_recip)
    h2 = _gatv2(h1, mask_bias, w2_ref[...], b2_ref[...],
                att2_bd_ref[...], att2_bdt_ref[...], att2_abs_ref, bias2_ref[...],
                heads=1, out_ch=ch2, concat=False, approx_recip=approx_recip)

    # F.normalize(h2, p=2, dim=1) == h2 * rsqrt(max(||h2||^2, eps^2)), eps = 1e-12
    ssq = jnp.sum(h2 * h2, axis=1, keepdims=True)
    z = h2 * lax.rsqrt(jnp.maximum(ssq, jnp.float32(1e-24)))
    z_ref[...] = z                                    # note: 4-lane store; pad/transpose at large N

    logits = jnp.einsum('nd,md->nm', z, z, preferred_element_type=jnp.float32)  # Z @ Z.T
    a_ref[...] = jax.nn.sigmoid(logits)


# ----------------------------- wrapper ----------------------------- #

def gatae_forward(x, adj, params1, params2, *, nheads, hidden_channels, out_channels2,
                  approx_recip=True):
    wl1, bl1, wr1, br1, att1, bias1 = params1
    wl2, bl2, wr2, br2, att2, bias2 = params2

    def pack(wl, bl, wr, br, att, heads, out_ch):
        # Plain-JAX glue on tiny parameter arrays (NOT a per-element input pre-scale).
        w = jnp.concatenate([wl, wr], axis=1)                       # [F, 2*H*C]
        b = jnp.concatenate([bl, br], axis=1)                       # [1, 2*H*C]
        # block-diagonal attention matrix (linear lrelu part): att_bd[h*C+c, h] = 0.6*att[h,c]
        eye = jnp.eye(heads, dtype=jnp.float32)
        att_bd = (_LIN_COEF * att)[:, :, None] * eye[:, None, :]    # [H, C, H]
        att_bd = att_bd.reshape(heads * out_ch, heads)              # [H*C, H]
        att_abs = (_ABS_COEF * att).reshape(heads * out_ch)         # [H*C]  (|.| part)
        return w, b, att_bd, att_bd.T, att_abs

    w1, b1, att1_bd, att1_bdt, att1_abs = pack(wl1, bl1, wr1, br1, att1,
                                               nheads, hidden_channels)
    w2, b2, att2_bd, att2_bdt, att2_abs = pack(wl2, bl2, wr2, br2, att2,
                                               1, out_channels2)

    # 0/1 adjacency is exact in bf16; halves the O(N^2) HBM read.
    adj_bf16 = adj.astype(jnp.bfloat16)

    N = x.shape[0]
    kernel = functools.partial(_gatae_kernel, heads1=nheads, ch1=hidden_channels,
                               ch2=out_channels2, approx_recip=approx_recip)

    vmem = pl.BlockSpec(memory_space=pltpu.MemorySpace.VMEM)
    smem = pl.BlockSpec(memory_space=pltpu.MemorySpace.SMEM)

    # Conservative VMEM budget for the fused whole-graph-resident layout; capped at
    # 64 MiB so the same value is legal on v7x (64 MiB physical) and v5e/v6e (128 MiB).
    feat = max(x.shape[1], 2 * nheads * hidden_channels, 128)
    need = (8 * N * N + 16 * N * feat) * 4
    vmem_limit = int(min(max(need, 32 * 1024 * 1024), 64 * 1024 * 1024))

    A_pred, z = pl.pallas_call(
        kernel,
        out_shape=(jax.ShapeDtypeStruct((N, N), jnp.float32),
                   jax.ShapeDtypeStruct((N, out_channels2), jnp.float32)),
        in_specs=[vmem, vmem,                       # x, adj (bf16)
                  vmem, vmem, vmem, vmem, vmem,     # w1, b1, att1_bd, att1_bd^T, bias1
                  vmem, vmem, vmem, vmem, vmem,     # w2, b2, att2_bd, att2_bd^T, bias2
                  smem, smem],                      # flat att scalars (1-D SMEM)
        out_specs=(vmem, vmem),
        compiler_params=pltpu.CompilerParams(vmem_limit_bytes=vmem_limit),
    )(x, adj_bf16,
      w1, b1, att1_bd, att1_bdt, bias1,
      w2, b2, att2_bd, att2_bdt, bias2,
      att1_abs, att2_abs)
    return A_pred, z


# ----------------------------- setup / main ----------------------------- #

def glorot(key, shape):
    fan_in, fan_out = shape[0], shape[1]
    lim = (6.0 / (fan_in + fan_out)) ** 0.5
    return jax.random.uniform(key, shape, jnp.float32, -lim, lim)


if __name__ == "__main__":
    key = jax.random.PRNGKey(0)
    N = 16
    in_channels, hidden_channels, out_channels = 4, 8, 4
    output_seq_len, nheads = 1, 4
    F_in = output_seq_len * in_channels

    keys = jax.random.split(key, 8)
    x = jax.random.normal(keys[0], (N, F_in), jnp.float32)

    # deterministic bidirectional ring graph as edge_index [2, E] (row 0 = src, row 1 = dst)
    src = jnp.concatenate([jnp.arange(N), (jnp.arange(N) + 1) % N])
    dst = jnp.concatenate([(jnp.arange(N) + 1) % N, jnp.arange(N)])
    edge_index = jnp.stack([src, dst]).astype(jnp.int32)

    # dense adjacency mask adj[target, source]; self loops added (GATv2Conv default)
    adj = jnp.zeros((N, N), jnp.float32)
    adj = adj.at[edge_index[1], edge_index[0]].set(1.0)
    adj = adj.at[jnp.arange(N), jnp.arange(N)].set(1.0)

    # layer 1: GATv2Conv(output_seq_len*in_channels, hidden_channels, heads=nheads, concat=True)
    H1, C1 = nheads, hidden_channels
    p1 = (glorot(keys[1], (F_in, H1 * C1)), jnp.zeros((1, H1 * C1), jnp.float32),
          glorot(keys[2], (F_in, H1 * C1)), jnp.zeros((1, H1 * C1), jnp.float32),
          glorot(keys[3], (H1, C1)),        jnp.zeros((1, H1 * C1), jnp.float32))

    # layer 2: GATv2Conv(nheads*hidden_channels, output_seq_len*out_channels, heads=1, concat=False)
    F2_in = nheads * hidden_channels
    C2 = output_seq_len * out_channels
    p2 = (glorot(keys[4], (F2_in, C2)), jnp.zeros((1, C2), jnp.float32),
          glorot(keys[5], (F2_in, C2)), jnp.zeros((1, C2), jnp.float32),
          glorot(keys[6], (1, C2)),     jnp.zeros((1, C2), jnp.float32))

    A_pred, z = gatae_forward(x, adj, p1, p2,
                              nheads=nheads, hidden_channels=hidden_channels,
                              out_channels2=C2)
    jax.block_until_ready((A_pred, z))
    assert A_pred.shape == (N, N) and z.shape == (N, C2)
    print("KERNEL_OK")
</pallas_src>

<mosaic_0001>
module attributes {stable_mosaic.version = 11 : i64} {
  func.func @_gatae_kernel(%arg0: memref<16x4xf32, #tpu.memory_space<vmem>>, %arg1: memref<16x16xbf16, #tpu.memory_space<vmem>>, %arg2: memref<4x64xf32, #tpu.memory_space<vmem>>, %arg3: memref<1x64xf32, #tpu.memory_space<vmem>>, %arg4: memref<32x4xf32, #tpu.memory_space<vmem>>, %arg5: memref<4x32xf32, #tpu.memory_space<vmem>>, %arg6: memref<1x32xf32, #tpu.memory_space<vmem>>, %arg7: memref<32x8xf32, #tpu.memory_space<vmem>>, %arg8: memref<1x8xf32, #tpu.memory_space<vmem>>, %arg9: memref<4x1xf32, #tpu.memory_space<vmem>>, %arg10: memref<1x4xf32, #tpu.memory_space<vmem>>, %arg11: memref<1x4xf32, #tpu.memory_space<vmem>>, %arg12: memref<32xf32, #tpu.memory_space<smem>>, %arg13: memref<4xf32, #tpu.memory_space<smem>>, %arg14: memref<16x16xf32, #tpu.memory_space<vmem>>, %arg15: memref<16x4xf32, #tpu.memory_space<vmem>>) attributes {dimension_semantics = [], scalar_prefetch = 0 : i64, scratch_operands = 0 : i64, tpu.core_type = #tpu.core_type<tc>} {
    %c0 = arith.constant 0 : index
    %c0_0 = arith.constant 0 : index
    %0 = vector.load %arg0[%c0, %c0_0] : memref<16x4xf32, #tpu.memory_space<vmem>>, vector<16x4xf32>
    %c0_1 = arith.constant 0 : index
    %c0_2 = arith.constant 0 : index
    %1 = vector.load %arg1[%c0_1, %c0_2] : memref<16x16xbf16, #tpu.memory_space<vmem>>, vector<16x16xbf16>
    %2 = arith.extf %1 : vector<16x16xbf16> to vector<16x16xf32>
    %cst = arith.constant 1.000000e+00 : f32
    %3 = vector.broadcast %cst : f32 to vector<16x16xf32>
    %4 = arith.subf %2, %3 : vector<16x16xf32>
    %cst_3 = arith.constant 1.000000e+30 : f32
    %5 = vector.broadcast %cst_3 : f32 to vector<16x16xf32>
    %6 = arith.mulf %4, %5 : vector<16x16xf32>
    %c0_4 = arith.constant 0 : index
    %c0_5 = arith.constant 0 : index
    %7 = vector.load %arg2[%c0_4, %c0_5] : memref<4x64xf32, #tpu.memory_space<vmem>>, vector<4x64xf32>
    %c0_6 = arith.constant 0 : index
    %c0_7 = arith.constant 0 : index
    %8 = vector.load %arg3[%c0_6, %c0_7] : memref<1x64xf32, #tpu.memory_space<vmem>>, vector<1x64xf32>
    %c0_8 = arith.constant 0 : index
    %c0_9 = arith.constant 0 : index
    %9 = vector.load %arg4[%c0_8, %c0_9] : memref<32x4xf32, #tpu.memory_space<vmem>>, vector<32x4xf32>
    %c0_10 = arith.constant 0 : index
    %c0_11 = arith.constant 0 : index
    %10 = vector.load %arg5[%c0_10, %c0_11] : memref<4x32xf32, #tpu.memory_space<vmem>>, vector<4x32xf32>
    %c0_12 = arith.constant 0 : index
    %c0_13 = arith.constant 0 : index
    %11 = vector.load %arg6[%c0_12, %c0_13] : memref<1x32xf32, #tpu.memory_space<vmem>>, vector<1x32xf32>
    %cst_14 = arith.constant dense<0.000000e+00> : vector<16x64xf32>
    %12 = tpu.matmul %0, %7, %cst_14 {dimension_numbers = #tpu.dot_dimension_numbers<[1], [0], [0], [1], [0, 0, 1, 1], [], []>} : vector<16x4xf32>, vector<4x64xf32>, vector<16x64xf32> -> vector<16x64xf32>
    %13 = vector.broadcast %8 : vector<1x64xf32> to vector<16x64xf32>
    %14 = arith.addf %12, %13 : vector<16x64xf32>
    %15 = vector.extract_strided_slice %14 {offsets = [0, 0], sizes = [16, 32], strides = [1, 1]} : vector<16x64xf32> to vector<16x32xf32>
    %16 = vector.extract_strided_slice %14 {offsets = [0, 32], sizes = [16, 32], strides = [1, 1]} : vector<16x64xf32> to vector<16x32xf32>
    %17 = tpu.transpose %15, [1, 0] : vector<16x32xf32> -> vector<32x16xf32>
    %cst_15 = arith.constant dense<0.000000e+00> : vector<16x4xf32>
    %18 = tpu.matmul %16, %9, %cst_15 {dimension_numbers = #tpu.dot_dimension_numbers<[1], [0], [0], [1], [0, 0, 1, 1], [], []>} : vector<16x32xf32>, vector<32x4xf32>, vector<16x4xf32> -> vector<16x4xf32>
    %cst_16 = arith.constant dense<0.000000e+00> : vector<4x16xf32>
    %19 = tpu.matmul %10, %17, %cst_16 {dimension_numbers = #tpu.dot_dimension_numbers<[1], [0], [0], [1], [0, 0, 1, 1], [], []>} : vector<4x32xf32>, vector<32x16xf32>, vector<4x16xf32> -> vector<4x16xf32>
    %20 = vector.extract_strided_slice %18 {offsets = [0, 0], sizes = [16, 1], strides = [1, 1]} : vector<16x4xf32> to vector<16x1xf32>
    %21 = vector.extract_strided_slice %19 {offsets = [0, 0], sizes = [1, 16], strides = [1, 1]} : vector<4x16xf32> to vector<1x16xf32>
    %22 = vector.broadcast %20 : vector<16x1xf32> to vector<16x16xf32>
    %23 = vector.broadcast %21 : vector<1x16xf32> to vector<16x16xf32>
    %24 = arith.addf %22, %23 : vector<16x16xf32>
    %25 = vector.extract_strided_slice %16 {offsets = [0, 0], sizes = [16, 1], strides = [1, 1]} : vector<16x32xf32> to vector<16x1xf32>
    %26 = vector.extract_strided_slice %17 {offsets = [0, 0], sizes = [1, 16], strides = [1, 1]} : vector<32x16xf32> to vector<1x16xf32>
    %27 = vector.broadcast %25 : vector<16x1xf32> to vector<16x16xf32>
    %28 = vector.broadcast %26 : vector<1x16xf32> to vector<16x16xf32>
    %29 = arith.addf %27, %28 : vector<16x16xf32>
    %c0_17 = arith.constant 0 : index
    %30 = memref.load %arg12[%c0_17] : memref<32xf32, #tpu.memory_space<smem>>
    %31 = math.absf %29 : vector<16x16xf32>
    %32 = vector.broadcast %30 : f32 to vector<16x16xf32>
    %33 = arith.mulf %32, %31 : vector<16x16xf32>
    %34 = arith.addf %24, %33 : vector<16x16xf32>
    %35 = vector.extract_strided_slice %16 {offsets = [0, 1], sizes = [16, 1], strides = [1, 1]} : vector<16x32xf32> to vector<16x1xf32>
    %36 = vector.extract_strided_slice %17 {offsets = [1, 0], sizes = [1, 16], strides = [1, 1]} : vector<32x16xf32> to vector<1x16xf32>
    %37 = vector.broadcast %35 : vector<16x1xf32> to vector<16x16xf32>
    %38 = vector.broadcast %36 : vector<1x16xf32> to vector<16x16xf32>
    %39 = arith.addf %37, %38 : vector<16x16xf32>
    %c1 = arith.constant 1 : index
    %40 = memref.load %arg12[%c1] : memref<32xf32, #tpu.memory_space<smem>>
    %41 = math.absf %39 : vector<16x16xf32>
    %42 = vector.broadcast %40 : f32 to vector<16x16xf32>
    %43 = arith.mulf %42, %41 : vector<16x16xf32>
    %44 = arith.addf %34, %43 : vector<16x16xf32>
    %45 = vector.extract_strided_slice %16 {offsets = [0, 2], sizes = [16, 1], strides = [1, 1]} : vector<16x32xf32> to vector<16x1xf32>
    %46 = vector.extract_strided_slice %17 {offsets = [2, 0], sizes = [1, 16], strides = [1, 1]} : vector<32x16xf32> to vector<1x16xf32>
    %47 = vector.broadcast %45 : vector<16x1xf32> to vector<16x16xf32>
    %48 = vector.broadcast %46 : vector<1x16xf32> to vector<16x16xf32>
    %49 = arith.addf %47, %48 : vector<16x16xf32>
    %c2 = arith.constant 2 : index
    %50 = memref.load %arg12[%c2] : memref<32xf32, #tpu.memory_space<smem>>
    %51 = math.absf %49 : vector<16x16xf32>
    %52 = vector.broadcast %50 : f32 to vector<16x16xf32>
    %53 = arith.mulf %52, %51 : vector<16x16xf32>
    %54 = arith.addf %44, %53 : vector<16x16xf32>
    %55 = vector.extract_strided_slice %16 {offsets = [0, 3], sizes = [16, 1], strides = [1, 1]} : vector<16x32xf32> to vector<16x1xf32>
    %56 = vector.extract_strided_slice %17 {offsets = [3, 0], sizes = [1, 16], strides = [1, 1]} : vector<32x16xf32> to vector<1x16xf32>
    %57 = vector.broadcast %55 : vector<16x1xf32> to vector<16x16xf32>
    %58 = vector.broadcast %56 : vector<1x16xf32> to vector<16x16xf32>
    %59 = arith.addf %57, %58 : vector<16x16xf32>
    %c3 = arith.constant 3 : index
    %60 = memref.load %arg12[%c3] : memref<32xf32, #tpu.memory_space<smem>>
    %61 = math.absf %59 : vector<16x16xf32>
    %62 = vector.broadcast %60 : f32 to vector<16x16xf32>
    %63 = arith.mulf %62, %61 : vector<16x16xf32>
    %64 = arith.addf %54, %63 : vector<16x16xf32>
    %65 = vector.extract_strided_slice %16 {offsets = [0, 4], sizes = [16, 1], strides = [1, 1]} : vector<16x32xf32> to vector<16x1xf32>
    %66 = vector.extract_strided_slice %17 {offsets = [4, 0], sizes = [1, 16], strides = [1, 1]} : vector<32x16xf32> to vector<1x16xf32>
    %67 = vector.broadcast %65 : vector<16x1xf32> to vector<16x16xf32>
    %68 = vector.broadcast %66 : vector<1x16xf32> to vector<16x16xf32>
    %69 = arith.addf %67, %68 : vector<16x16xf32>
    %c4 = arith.constant 4 : index
    %70 = memref.load %arg12[%c4] : memref<32xf32, #tpu.memory_space<smem>>
    %71 = math.absf %69 : vector<16x16xf32>
    %72 = vector.broadcast %70 : f32 to vector<16x16xf32>
    %73 = arith.mulf %72, %71 : vector<16x16xf32>
    %74 = arith.addf %64, %73 : vector<16x16xf32>
    %75 = vector.extract_strided_slice %16 {offsets = [0, 5], sizes = [16, 1], strides = [1, 1]} : vector<16x32xf32> to vector<16x1xf32>
    %76 = vector.extract_strided_slice %17 {offsets = [5, 0], sizes = [1, 16], strides = [1, 1]} : vector<32x16xf32> to vector<1x16xf32>
    %77 = vector.broadcast %75 : vector<16x1xf32> to vector<16x16xf32>
    %78 = vector.broadcast %76 : vector<1x16xf32> to vector<16x16xf32>
    %79 = arith.addf %77, %78 : vector<16x16xf32>
    %c5 = arith.constant 5 : index
    %80 = memref.load %arg12[%c5] : memref<32xf32, #tpu.memory_space<smem>>
    %81 = math.absf %79 : vector<16x16xf32>
    %82 = vector.broadcast %80 : f32 to vector<16x16xf32>
    %83 = arith.mulf %82, %81 : vector<16x16xf32>
    %84 = arith.addf %74, %83 : vector<16x16xf32>
    %85 = vector.extract_strided_slice %16 {offsets = [0, 6], sizes = [16, 1], strides = [1, 1]} : vector<16x32xf32> to vector<16x1xf32>
    %86 = vector.extract_strided_slice %17 {offsets = [6, 0], sizes = [1, 16], strides = [1, 1]} : vector<32x16xf32> to vector<1x16xf32>
    %87 = vector.broadcast %85 : vector<16x1xf32> to vector<16x16xf32>
    %88 = vector.broadcast %86 : vector<1x16xf32> to vector<16x16xf32>
    %89 = arith.addf %87, %88 : vector<16x16xf32>
    %c6 = arith.constant 6 : index
    %90 = memref.load %arg12[%c6] : memref<32xf32, #tpu.memory_space<smem>>
    %91 = math.absf %89 : vector<16x16xf32>
    %92 = vector.broadcast %90 : f32 to vector<16x16xf32>
    %93 = arith.mulf %92, %91 : vector<16x16xf32>
    %94 = arith.addf %84, %93 : vector<16x16xf32>
    %95 = vector.extract_strided_slice %16 {offsets = [0, 7], sizes = [16, 1], strides = [1, 1]} : vector<16x32xf32> to vector<16x1xf32>
    %96 = vector.extract_strided_slice %17 {offsets = [7, 0], sizes = [1, 16], strides = [1, 1]} : vector<32x16xf32> to vector<1x16xf32>
    %97 = vector.broadcast %95 : vector<16x1xf32> to vector<16x16xf32>
    %98 = vector.broadcast %96 : vector<1x16xf32> to vector<16x16xf32>
    %99 = arith.addf %97, %98 : vector<16x16xf32>
    %c7 = arith.constant 7 : index
    %100 = memref.load %arg12[%c7] : memref<32xf32, #tpu.memory_space<smem>>
    %101 = math.absf %99 : vector<16x16xf32>
    %102 = vector.broadcast %100 : f32 to vector<16x16xf32>
    %103 = arith.mulf %102, %101 : vector<16x16xf32>
    %104 = arith.addf %94, %103 : vector<16x16xf32>
    %105 = arith.addf %104, %6 : vector<16x16xf32>
    %cst_18 = arith.constant dense<0xFF800000> : vector<16xf32>
    %106 = vector.multi_reduction <maximumf>, %105, %cst_18 [1] : vector<16x16xf32> to vector<16xf32>
    %107 = vector.shape_cast %106 : vector<16xf32> to vector<16x1xf32>
    %108 = vector.broadcast %107 : vector<16x1xf32> to vector<16x16xf32>
    %109 = arith.subf %105, %108 : vector<16x16xf32>
    %110 = math.exp %109 : vector<16x16xf32>
    %cst_19 = arith.constant dense<0.000000e+00> : vector<16xf32>
    %111 = vector.multi_reduction <add>, %110, %cst_19 [1] : vector<16x16xf32> to vector<16xf32>
    %112 = vector.shape_cast %111 : vector<16xf32> to vector<16x1xf32>
    %113 = tpu.reciprocal %112 {approx = true} : vector<16x1xf32> -> vector<16x1xf32>
    %114 = vector.broadcast %113 : vector<16x1xf32> to vector<16x16xf32>
    %115 = arith.mulf %110, %114 : vector<16x16xf32>
    %116 = vector.extract_strided_slice %15 {offsets = [0, 0], sizes = [16, 8], strides = [1, 1]} : vector<16x32xf32> to vector<16x8xf32>
    %cst_20 = arith.constant dense<0.000000e+00> : vector<16x8xf32>
    %117 = tpu.matmul %115, %116, %cst_20 {dimension_numbers = #tpu.dot_dimension_numbers<[1], [0], [0], [1], [0, 0, 1, 1], [], []>} : vector<16x16xf32>, vector<16x8xf32>, vector<16x8xf32> -> vector<16x8xf32>
    %118 = vector.extract_strided_slice %18 {offsets = [0, 1], sizes = [16, 1], strides = [1, 1]} : vector<16x4xf32> to vector<16x1xf32>
    %119 = vector.extract_strided_slice %19 {offsets = [1, 0], sizes = [1, 16], strides = [1, 1]} : vector<4x16xf32> to vector<1x16xf32>
    %120 = vector.broadcast %118 : vector<16x1xf32> to vector<16x16xf32>
    %121 = vector.broadcast %119 : vector<1x16xf32> to vector<16x16xf32>
    %122 = arith.addf %120, %121 : vector<16x16xf32>
    %123 = vector.extract_strided_slice %16 {offsets = [0, 8], sizes = [16, 1], strides = [1, 1]} : vector<16x32xf32> to vector<16x1xf32>
    %124 = vector.extract_strided_slice %17 {offsets = [8, 0], sizes = [1, 16], strides = [1, 1]} : vector<32x16xf32> to vector<1x16xf32>
    %125 = vector.broadcast %123 : vector<16x1xf32> to vector<16x16xf32>
    %126 = vector.broadcast %124 : vector<1x16xf32> to vector<16x16xf32>
    %127 = arith.addf %125, %126 : vector<16x16xf32>
    %c8 = arith.constant 8 : index
    %128 = memref.load %arg12[%c8] : memref<32xf32, #tpu.memory_space<smem>>
    %129 = math.absf %127 : vector<16x16xf32>
    %130 = vector.broadcast %128 : f32 to vector<16x16xf32>
    %131 = arith.mulf %130, %129 : vector<16x16xf32>
    %132 = arith.addf %122, %131 : vector<16x16xf32>
    %133 = vector.extract_strided_slice %16 {offsets = [0, 9], sizes = [16, 1], strides = [1, 1]} : vector<16x32xf32> to vector<16x1xf32>
    %134 = vector.extract_strided_slice %17 {offsets = [9, 0], sizes = [1, 16], strides = [1, 1]} : vector<32x16xf32> to vector<1x16xf32>
    %135 = vector.broadcast %133 : vector<16x1xf32> to vector<16x16xf32>
    %136 = vector.broadcast %134 : vector<1x16xf32> to vector<16x16xf32>
    %137 = arith.addf %135, %136 : vector<16x16xf32>
    %c9 = arith.constant 9 : index
    %138 = memref.load %arg12[%c9] : memref<32xf32, #tpu.memory_space<smem>>
    %139 = math.absf %137 : vector<16x16xf32>
    %140 = vector.broadcast %138 : f32 to vector<16x16xf32>
    %141 = arith.mulf %140, %139 : vector<16x16xf32>
    %142 = arith.addf %132, %141 : vector<16x16xf32>
    %143 = vector.extract_strided_slice %16 {offsets = [0, 10], sizes = [16, 1], strides = [1, 1]} : vector<16x32xf32> to vector<16x1xf32>
    %144 = vector.extract_strided_slice %17 {offsets = [10, 0], sizes = [1, 16], strides = [1, 1]} : vector<32x16xf32> to vector<1x16xf32>
    %145 = vector.broadcast %143 : vector<16x1xf32> to vector<16x16xf32>
    %146 = vector.broadcast %144 : vector<1x16xf32> to vector<16x16xf32>
    %147 = arith.addf %145, %146 : vector<16x16xf32>
    %c10 = arith.constant 10 : index
    %148 = memref.load %arg12[%c10] : memref<32xf32, #tpu.memory_space<smem>>
    %149 = math.absf %147 : vector<16x16xf32>
    %150 = vector.broadcast %148 : f32 to vector<16x16xf32>
    %151 = arith.mulf %150, %149 : vector<16x16xf32>
    %152 = arith.addf %142, %151 : vector<16x16xf32>
    %153 = vector.extract_strided_slice %16 {offsets = [0, 11], sizes = [16, 1], strides = [1, 1]} : vector<16x32xf32> to vector<16x1xf32>
    %154 = vector.extract_strided_slice %17 {offsets = [11, 0], sizes = [1, 16], strides = [1, 1]} : vector<32x16xf32> to vector<1x16xf32>
    %155 = vector.broadcast %153 : vector<16x1xf32> to vector<16x16xf32>
    %156 = vector.broadcast %154 : vector<1x16xf32> to vector<16x16xf32>
    %157 = arith.addf %155, %156 : vector<16x16xf32>
    %c11 = arith.constant 11 : index
    %158 = memref.load %arg12[%c11] : memref<32xf32, #tpu.memory_space<smem>>
    %159 = math.absf %157 : vector<16x16xf32>
    %160 = vector.broadcast %158 : f32 to vector<16x16xf32>
    %161 = arith.mulf %160, %159 : vector<16x16xf32>
    %162 = arith.addf %152, %161 : vector<16x16xf32>
    %163 = vector.extract_strided_slice %16 {offsets = [0, 12], sizes = [16, 1], strides = [1, 1]} : vector<16x32xf32> to vector<16x1xf32>
    %164 = vector.extract_strided_slice %17 {offsets = [12, 0], sizes = [1, 16], strides = [1, 1]} : vector<32x16xf32> to vector<1x16xf32>
    %165 = vector.broadcast %163 : vector<16x1xf32> to vector<16x16xf32>
    %166 = vector.broadcast %164 : vector<1x16xf32> to vector<16x16xf32>
    %167 = arith.addf %165, %166 : vector<16x16xf32>
    %c12 = arith.constant 12 : index
    %168 = memref.load %arg12[%c12] : memref<32xf32, #tpu.memory_space<smem>>
    %169 = math.absf %167 : vector<16x16xf32>
    %170 = vector.broadcast %168 : f32 to vector<16x16xf32>
    %171 = arith.mulf %170, %169 : vector<16x16xf32>
    %172 = arith.addf %162, %171 : vector<16x16xf32>
    %173 = vector.extract_strided_slice %16 {offsets = [0, 13], sizes = [16, 1], strides = [1, 1]} : vector<16x32xf32> to vector<16x1xf32>
    %174 = vector.extract_strided_slice %17 {offsets = [13, 0], sizes = [1, 16], strides = [1, 1]} : vector<32x16xf32> to vector<1x16xf32>
    %175 = vector.broadcast %173 : vector<16x1xf32> to vector<16x16xf32>
    %176 = vector.broadcast %174 : vector<1x16xf32> to vector<16x16xf32>
    %177 = arith.addf %175, %176 : vector<16x16xf32>
    %c13 = arith.constant 13 : index
    %178 = memref.load %arg12[%c13] : memref<32xf32, #tpu.memory_space<smem>>
    %179 = math.absf %177 : vector<16x16xf32>
    %180 = vector.broadcast %178 : f32 to vector<16x16xf32>
    %181 = arith.mulf %180, %179 : vector<16x16xf32>
    %182 = arith.addf %172, %181 : vector<16x16xf32>
    %183 = vector.extract_strided_slice %16 {offsets = [0, 14], sizes = [16, 1], strides = [1, 1]} : vector<16x32xf32> to vector<16x1xf32>
    %184 = vector.extract_strided_slice %17 {offsets = [14, 0], sizes = [1, 16], strides = [1, 1]} : vector<32x16xf32> to vector<1x16xf32>
    %185 = vector.broadcast %183 : vector<16x1xf32> to vector<16x16xf32>
    %186 = vector.broadcast %184 : vector<1x16xf32> to vector<16x16xf32>
    %187 = arith.addf %185, %186 : vector<16x16xf32>
    %c14 = arith.constant 14 : index
    %188 = memref.load %arg12[%c14] : memref<32xf32, #tpu.memory_space<smem>>
    %189 = math.absf %187 : vector<16x16xf32>
    %190 = vector.broadcast %188 : f32 to vector<16x16xf32>
    %191 = arith.mulf %190, %189 : vector<16x16xf32>
    %192 = arith.addf %182, %191 : vector<16x16xf32>
    %193 = vector.extract_strided_slice %16 {offsets = [0, 15], sizes = [16, 1], strides = [1, 1]} : vector<16x32xf32> to vector<16x1xf32>
    %194 = vector.extract_strided_slice %17 {offsets = [15, 0], sizes = [1, 16], strides = [1, 1]} : vector<32x16xf32> to vector<1x16xf32>
    %195 = vector.broadcast %193 : vector<16x1xf32> to vector<16x16xf32>
    %196 = vector.broadcast %194 : vector<1x16xf32> to vector<16x16xf32>
    %197 = arith.addf %195, %196 : vector<16x16xf32>
    %c15 = arith.constant 15 : index
    %198 = memref.load %arg12[%c15] : memref<32xf32, #tpu.memory_space<smem>>
    %199 = math.absf %197 : vector<16x16xf32>
    %200 = vector.broadcast %198 : f32 to vector<16x16xf32>
    %201 = arith.mulf %200, %199 : vector<16x16xf32>
    %202 = arith.addf %192, %201 : vector<16x16xf32>
    %203 = arith.addf %202, %6 : vector<16x16xf32>
    %cst_21 = arith.constant dense<0xFF800000> : vector<16xf32>
    %204 = vector.multi_reduction <maximumf>, %203, %cst_21 [1] : vector<16x16xf32> to vector<16xf32>
    %205 = vector.shape_cast %204 : vector<16xf32> to vector<16x1xf32>
    %206 = vector.broadcast %205 : vector<16x1xf32> to vector<16x16xf32>
    %207 = arith.subf %203, %206 : vector<16x16xf32>
    %208 = math.exp %207 : vector<16x16xf32>
    %cst_22 = arith.constant dense<0.000000e+00> : vector<16xf32>
    %209 = vector.multi_reduction <add>, %208, %cst_22 [1] : vector<16x16xf32> to vector<16xf32>
    %210 = vector.shape_cast %209 : vector<16xf32> to vector<16x1xf32>
    %211 = tpu.reciprocal %210 {approx = true} : vector<16x1xf32> -> vector<16x1xf32>
    %212 = vector.broadcast %211 : vector<16x1xf32> to vector<16x16xf32>
    %213 = arith.mulf %208, %212 : vector<16x16xf32>
    %214 = vector.extract_strided_slice %15 {offsets = [0, 8], sizes = [16, 8], strides = [1, 1]} : vector<16x32xf32> to vector<16x8xf32>
    %cst_23 = arith.constant dense<0.000000e+00> : vector<16x8xf32>
    %215 = tpu.matmul %213, %214, %cst_23 {dimension_numbers = #tpu.dot_dimension_numbers<[1], [0], [0], [1], [0, 0, 1, 1], [], []>} : vector<16x16xf32>, vector<16x8xf32>, vector<16x8xf32> -> vector<16x8xf32>
    %216 = vector.extract_strided_slice %18 {offsets = [0, 2], sizes = [16, 1], strides = [1, 1]} : vector<16x4xf32> to vector<16x1xf32>
    %217 = vector.extract_strided_slice %19 {offsets = [2, 0], sizes = [1, 16], strides = [1, 1]} : vector<4x16xf32> to vector<1x16xf32>
    %218 = vector.broadcast %216 : vector<16x1xf32> to vector<16x16xf32>
    %219 = vector.broadcast %217 : vector<1x16xf32> to vector<16x16xf32>
    %220 = arith.addf %218, %219 : vector<16x16xf32>
    %221 = vector.extract_strided_slice %16 {offsets = [0, 16], sizes = [16, 1], strides = [1, 1]} : vector<16x32xf32> to vector<16x1xf32>
    %222 = vector.extract_strided_slice %17 {offsets = [16, 0], sizes = [1, 16], strides = [1, 1]} : vector<32x16xf32> to vector<1x16xf32>
    %223 = vector.broadcast %221 : vector<16x1xf32> to vector<16x16xf32>
    %224 = vector.broadcast %222 : vector<1x16xf32> to vector<16x16xf32>
    %225 = arith.addf %223, %224 : vector<16x16xf32>
    %c16 = arith.constant 16 : index
    %226 = memref.load %arg12[%c16] : memref<32xf32, #tpu.memory_space<smem>>
    %227 = math.absf %225 : vector<16x16xf32>
    %228 = vector.broadcast %226 : f32 to vector<16x16xf32>
    %229 = arith.mulf %228, %227 : vector<16x16xf32>
    %230 = arith.addf %220, %229 : vector<16x16xf32>
    %231 = vector.extract_strided_slice %16 {offsets = [0, 17], sizes = [16, 1], strides = [1, 1]} : vector<16x32xf32> to vector<16x1xf32>
    %232 = vector.extract_strided_slice %17 {offsets = [17, 0], sizes = [1, 16], strides = [1, 1]} : vector<32x16xf32> to vector<1x16xf32>
    %233 = vector.broadcast %231 : vector<16x1xf32> to vector<16x16xf32>
    %234 = vector.broadcast %232 : vector<1x16xf32> to vector<16x16xf32>
    %235 = arith.addf %233, %234 : vector<16x16xf32>
    %c17 = arith.constant 17 : index
    %236 = memref.load %arg12[%c17] : memref<32xf32, #tpu.memory_space<smem>>
    %237 = math.absf %235 : vector<16x16xf32>
    %238 = vector.broadcast %236 : f32 to vector<16x16xf32>
    %239 = arith.mulf %238, %237 : vector<16x16xf32>
    %240 = arith.addf %230, %239 : vector<16x16xf32>
    %241 = vector.extract_strided_slice %16 {offsets = [0, 18], sizes = [16, 1], strides = [1, 1]} : vector<16x32xf32> to vector<16x1xf32>
    %242 = vector.extract_strided_slice %17 {offsets = [18, 0], sizes = [1, 16], strides = [1, 1]} : vector<32x16xf32> to vector<1x16xf32>
    %243 = vector.broadcast %241 : vector<16x1xf32> to vector<16x16xf32>
    %244 = vector.broadcast %242 : vector<1x16xf32> to vector<16x16xf32>
    %245 = arith.addf %243, %244 : vector<16x16xf32>
    %c18 = arith.constant 18 : index
    %246 = memref.load %arg12[%c18] : memref<32xf32, #tpu.memory_space<smem>>
    %247 = math.absf %245 : vector<16x16xf32>
    %248 = vector.broadcast %246 : f32 to vector<16x16xf32>
    %249 = arith.mulf %248, %247 : vector<16x16xf32>
    %250 = arith.addf %240, %249 : vector<16x16xf32>
    %251 = vector.extract_strided_slice %16 {offsets = [0, 19], sizes = [16, 1], strides = [1, 1]} : vector<16x32xf32> to vector<16x1xf32>
    %252 = vector.extract_strided_slice %17 {offsets = [19, 0], sizes = [1, 16], strides = [1, 1]} : vector<32x16xf32> to vector<1x16xf32>
    %253 = vector.broadcast %251 : vector<16x1xf32> to vector<16x16xf32>
    %254 = vector.broadcast %252 : vector<1x16xf32> to vector<16x16xf32>
    %255 = arith.addf %253, %254 : vector<16x16xf32>
    %c19 = arith.constant 19 : index
    %256 = memref.load %arg12[%c19] : memref<32xf32, #tpu.memory_space<smem>>
    %257 = math.absf %255 : vector<16x16xf32>
    %258 = vector.broadcast %256 : f32 to vector<16x16xf32>
    %259 = arith.mulf %258, %257 : vector<16x16xf32>
    %260 = arith.addf %250, %259 : vector<16x16xf32>
    %261 = vector.extract_strided_slice %16 {offsets = [0, 20], sizes = [16, 1], strides = [1, 1]} : vector<16x32xf32> to vector<16x1xf32>
    %262 = vector.extract_strided_slice %17 {offsets = [20, 0], sizes = [1, 16], strides = [1, 1]} : vector<32x16xf32> to vector<1x16xf32>
    %263 = vector.broadcast %261 : vector<16x1xf32> to vector<16x16xf32>
    %264 = vector.broadcast %262 : vector<1x16xf32> to vector<16x16xf32>
    %265 = arith.addf %263, %264 : vector<16x16xf32>
    %c20 = arith.constant 20 : index
    %266 = memref.load %arg12[%c20] : memref<32xf32, #tpu.memory_space<smem>>
    %267 = math.absf %265 : vector<16x16xf32>
    %268 = vector.broadcast %266 : f32 to vector<16x16xf32>
    %269 = arith.mulf %268, %267 : vector<16x16xf32>
    %270 = arith.addf %260, %269 : vector<16x16xf32>
    %271 = vector.extract_strided_slice %16 {offsets = [0, 21], sizes = [16, 1], strides = [1, 1]} : vector<16x32xf32> to vector<16x1xf32>
    %272 = vector.extract_strided_slice %17 {offsets = [21, 0], sizes = [1, 16], strides = [1, 1]} : vector<32x16xf32> to vector<1x16xf32>
    %273 = vector.broadcast %271 : vector<16x1xf32> to vector<16x16xf32>
    %274 = vector.broadcast %272 : vector<1x16xf32> to vector<16x16xf32>
    %275 = arith.addf %273, %274 : vector<16x16xf32>
    %c21 = arith.constant 21 : index
    %276 = memref.load %arg12[%c21] : memref<32xf32, #tpu.memory_space<smem>>
    %277 = math.absf %275 : vector<16x16xf32>
    %278 = vector.broadcast %276 : f32 to vector<16x16xf32>
    %279 = arith.mulf %278, %277 : vector<16x16xf32>
    %280 = arith.addf %270, %279 : vector<16x16xf32>
    %281 = vector.extract_strided_slice %16 {offsets = [0, 22], sizes = [16, 1], strides = [1, 1]} : vector<16x32xf32> to vector<16x1xf32>
    %282 = vector.extract_strided_slice %17 {offsets = [22, 0], sizes = [1, 16], strides = [1, 1]} : vector<32x16xf32> to vector<1x16xf32>
    %283 = vector.broadcast %281 : vector<16x1xf32> to vector<16x16xf32>
    %284 = vector.broadcast %282 : vector<1x16xf32> to vector<16x16xf32>
    %285 = arith.addf %283, %284 : vector<16x16xf32>
    %c22 = arith.constant 22 : index
    %286 = memref.load %arg12[%c22] : memref<32xf32, #tpu.memory_space<smem>>
    %287 = math.absf %285 : vector<16x16xf32>
    %288 = vector.broadcast %286 : f32 to vector<16x16xf32>
    %289 = arith.mulf %288, %287 : vector<16x16xf32>
    %290 = arith.addf %280, %289 : vector<16x16xf32>
    %291 = vector.extract_strided_slice %16 {offsets = [0, 23], sizes = [16, 1], strides = [1, 1]} : vector<16x32xf32> to vector<16x1xf32>
    %292 = vector.extract_strided_slice %17 {offsets = [23, 0], sizes = [1, 16], strides = [1, 1]} : vector<32x16xf32> to vector<1x16xf32>
    %293 = vector.broadcast %291 : vector<16x1xf32> to vector<16x16xf32>
    %294 = vector.broadcast %292 : vector<1x16xf32> to vector<16x16xf32>
    %295 = arith.addf %293, %294 : vector<16x16xf32>
    %c23 = arith.constant 23 : index
    %296 = memref.load %arg12[%c23] : memref<32xf32, #tpu.memory_space<smem>>
    %297 = math.absf %295 : vector<16x16xf32>
    %298 = vector.broadcast %296 : f32 to vector<16x16xf32>
    %299 = arith.mulf %298, %297 : vector<16x16xf32>
    %300 = arith.addf %290, %299 : vector<16x16xf32>
    %301 = arith.addf %300, %6 : vector<16x16xf32>
    %cst_24 = arith.constant dense<0xFF800000> : vector<16xf32>
    %302 = vector.multi_reduction <maximumf>, %301, %cst_24 [1] : vector<16x16xf32> to vector<16xf32>
    %303 = vector.shape_cast %302 : vector<16xf32> to vector<16x1xf32>
    %304 = vector.broadcast %303 : vector<16x1xf32> to vector<16x16xf32>
    %305 = arith.subf %301, %304 : vector<16x16xf32>
    %306 = math.exp %305 : vector<16x16xf32>
    %cst_25 = arith.constant dense<0.000000e+00> : vector<16xf32>
    %307 = vector.multi_reduction <add>, %306, %cst_25 [1] : vector<16x16xf32> to vector<16xf32>
    %308 = vector.shape_cast %307 : vector<16xf32> to vector<16x1xf32>
    %309 = tpu.reciprocal %308 {approx = true} : vector<16x1xf32> -> vector<16x1xf32>
    %310 = vector.broadcast %309 : vector<16x1xf32> to vector<16x16xf32>
    %311 = arith.mulf %306, %310 : vector<16x16xf32>
    %312 = vector.extract_strided_slice %15 {offsets = [0, 16], sizes = [16, 8], strides = [1, 1]} : vector<16x32xf32> to vector<16x8xf32>
    %cst_26 = arith.constant dense<0.000000e+00> : vector<16x8xf32>
    %313 = tpu.matmul %311, %312, %cst_26 {dimension_numbers = #tpu.dot_dimension_numbers<[1], [0], [0], [1], [0, 0, 1, 1], [], []>} : vector<16x16xf32>, vector<16x8xf32>, vector<16x8xf32> -> vector<16x8xf32>
    %314 = vector.extract_strided_slice %18 {offsets = [0, 3], sizes = [16, 1], strides = [1, 1]} : vector<16x4xf32> to vector<16x1xf32>
    %315 = vector.extract_strided_slice %19 {offsets = [3, 0], sizes = [1, 16], strides = [1, 1]} : vector<4x16xf32> to vector<1x16xf32>
    %316 = vector.broadcast %314 : vector<16x1xf32> to vector<16x16xf32>
    %317 = vector.broadcast %315 : vector<1x16xf32> to vector<16x16xf32>
    %318 = arith.addf %316, %317 : vector<16x16xf32>
    %319 = vector.extract_strided_slice %16 {offsets = [0, 24], sizes = [16, 1], strides = [1, 1]} : vector<16x32xf32> to vector<16x1xf32>
    %320 = vector.extract_strided_slice %17 {offsets = [24, 0], sizes = [1, 16], strides = [1, 1]} : vector<32x16xf32> to vector<1x16xf32>
    %321 = vector.broadcast %319 : vector<16x1xf32> to vector<16x16xf32>
    %322 = vector.broadcast %320 : vector<1x16xf32> to vector<16x16xf32>
    %323 = arith.addf %321, %322 : vector<16x16xf32>
    %c24 = arith.constant 24 : index
    %324 = memref.load %arg12[%c24] : memref<32xf32, #tpu.memory_space<smem>>
    %325 = math.absf %323 : vector<16x16xf32>
    %326 = vector.broadcast %324 : f32 to vector<16x16xf32>
    %327 = arith.mulf %326, %325 : vector<16x16xf32>
    %328 = arith.addf %318, %327 : vector<16x16xf32>
    %329 = vector.extract_strided_slice %16 {offsets = [0, 25], sizes = [16, 1], strides = [1, 1]} : vector<16x32xf32> to vector<16x1xf32>
    %330 = vector.extract_strided_slice %17 {offsets = [25, 0], sizes = [1, 16], strides = [1, 1]} : vector<32x16xf32> to vector<1x16xf32>
    %331 = vector.broadcast %329 : vector<16x1xf32> to vector<16x16xf32>
    %332 = vector.broadcast %330 : vector<1x16xf32> to vector<16x16xf32>
    %333 = arith.addf %331, %332 : vector<16x16xf32>
    %c25 = arith.constant 25 : index
    %334 = memref.load %arg12[%c25] : memref<32xf32, #tpu.memory_space<smem>>
    %335 = math.absf %333 : vector<16x16xf32>
    %336 = vector.broadcast %334 : f32 to vector<16x16xf32>
    %337 = arith.mulf %336, %335 : vector<16x16xf32>
    %338 = arith.addf %328, %337 : vector<16x16xf32>
    %339 = vector.extract_strided_slice %16 {offsets = [0, 26], sizes = [16, 1], strides = [1, 1]} : vector<16x32xf32> to vector<16x1xf32>
    %340 = vector.extract_strided_slice %17 {offsets = [26, 0], sizes = [1, 16], strides = [1, 1]} : vector<32x16xf32> to vector<1x16xf32>
    %341 = vector.broadcast %339 : vector<16x1xf32> to vector<16x16xf32>
    %342 = vector.broadcast %340 : vector<1x16xf32> to vector<16x16xf32>
    %343 = arith.addf %341, %342 : vector<16x16xf32>
    %c26 = arith.constant 26 : index
    %344 = memref.load %arg12[%c26] : memref<32xf32, #tpu.memory_space<smem>>
    %345 = math.absf %343 : vector<16x16xf32>
    %346 = vector.broadcast %344 : f32 to vector<16x16xf32>
    %347 = arith.mulf %346, %345 : vector<16x16xf32>
    %348 = arith.addf %338, %347 : vector<16x16xf32>
    %349 = vector.extract_strided_slice %16 {offsets = [0, 27], sizes = [16, 1], strides = [1, 1]} : vector<16x32xf32> to vector<16x1xf32>
    %350 = vector.extract_strided_slice %17 {offsets = [27, 0], sizes = [1, 16], strides = [1, 1]} : vector<32x16xf32> to vector<1x16xf32>
    %351 = vector.broadcast %349 : vector<16x1xf32> to vector<16x16xf32>
    %352 = vector.broadcast %350 : vector<1x16xf32> to vector<16x16xf32>
    %353 = arith.addf %351, %352 : vector<16x16xf32>
    %c27 = arith.constant 27 : index
    %354 = memref.load %arg12[%c27] : memref<32xf32, #tpu.memory_space<smem>>
    %355 = math.absf %353 : vector<16x16xf32>
    %356 = vector.broadcast %354 : f32 to vector<16x16xf32>
    %357 = arith.mulf %356, %355 : vector<16x16xf32>
    %358 = arith.addf %348, %357 : vector<16x16xf32>
    %359 = vector.extract_strided_slice %16 {offsets = [0, 28], sizes = [16, 1], strides = [1, 1]} : vector<16x32xf32> to vector<16x1xf32>
    %360 = vector.extract_strided_slice %17 {offsets = [28, 0], sizes = [1, 16], strides = [1, 1]} : vector<32x16xf32> to vector<1x16xf32>
    %361 = vector.broadcast %359 : vector<16x1xf32> to vector<16x16xf32>
    %362 = vector.broadcast %360 : vector<1x16xf32> to vector<16x16xf32>
    %363 = arith.addf %361, %362 : vector<16x16xf32>
    %c28 = arith.constant 28 : index
    %364 = memref.load %arg12[%c28] : memref<32xf32, #tpu.memory_space<smem>>
    %365 = math.absf %363 : vector<16x16xf32>
    %366 = vector.broadcast %364 : f32 to vector<16x16xf32>
    %367 = arith.mulf %366, %365 : vector<16x16xf32>
    %368 = arith.addf %358, %367 : vector<16x16xf32>
    %369 = vector.extract_strided_slice %16 {offsets = [0, 29], sizes = [16, 1], strides = [1, 1]} : vector<16x32xf32> to vector<16x1xf32>
    %370 = vector.extract_strided_slice %17 {offsets = [29, 0], sizes = [1, 16], strides = [1, 1]} : vector<32x16xf32> to vector<1x16xf32>
    %371 = vector.broadcast %369 : vector<16x1xf32> to vector<16x16xf32>
    %372 = vector.broadcast %370 : vector<1x16xf32> to vector<16x16xf32>
    %373 = arith.addf %371, %372 : vector<16x16xf32>
    %c29 = arith.constant 29 : index
    %374 = memref.load %arg12[%c29] : memref<32xf32, #tpu.memory_space<smem>>
    %375 = math.absf %373 : vector<16x16xf32>
    %376 = vector.broadcast %374 : f32 to vector<16x16xf32>
    %377 = arith.mulf %376, %375 : vector<16x16xf32>
    %378 = arith.addf %368, %377 : vector<16x16xf32>
    %379 = vector.extract_strided_slice %16 {offsets = [0, 30], sizes = [16, 1], strides = [1, 1]} : vector<16x32xf32> to vector<16x1xf32>
    %380 = vector.extract_strided_slice %17 {offsets = [30, 0], sizes = [1, 16], strides = [1, 1]} : vector<32x16xf32> to vector<1x16xf32>
    %381 = vector.broadcast %379 : vector<16x1xf32> to vector<16x16xf32>
    %382 = vector.broadcast %380 : vector<1x16xf32> to vector<16x16xf32>
    %383 = arith.addf %381, %382 : vector<16x16xf32>
    %c30 = arith.constant 30 : index
    %384 = memref.load %arg12[%c30] : memref<32xf32, #tpu.memory_space<smem>>
    %385 = math.absf %383 : vector<16x16xf32>
    %386 = vector.broadcast %384 : f32 to vector<16x16xf32>
    %387 = arith.mulf %386, %385 : vector<16x16xf32>
    %388 = arith.addf %378, %387 : vector<16x16xf32>
    %389 = vector.extract_strided_slice %16 {offsets = [0, 31], sizes = [16, 1], strides = [1, 1]} : vector<16x32xf32> to vector<16x1xf32>
    %390 = vector.extract_strided_slice %17 {offsets = [31, 0], sizes = [1, 16], strides = [1, 1]} : vector<32x16xf32> to vector<1x16xf32>
    %391 = vector.broadcast %389 : vector<16x1xf32> to vector<16x16xf32>
    %392 = vector.broadcast %390 : vector<1x16xf32> to vector<16x16xf32>
    %393 = arith.addf %391, %392 : vector<16x16xf32>
    %c31 = arith.constant 31 : index
    %394 = memref.load %arg12[%c31] : memref<32xf32, #tpu.memory_space<smem>>
    %395 = math.absf %393 : vector<16x16xf32>
    %396 = vector.broadcast %394 : f32 to vector<16x16xf32>
    %397 = arith.mulf %396, %395 : vector<16x16xf32>
    %398 = arith.addf %388, %397 : vector<16x16xf32>
    %399 = arith.addf %398, %6 : vector<16x16xf32>
    %cst_27 = arith.constant dense<0xFF800000> : vector<16xf32>
    %400 = vector.multi_reduction <maximumf>, %399, %cst_27 [1] : vector<16x16xf32> to vector<16xf32>
    %401 = vector.shape_cast %400 : vector<16xf32> to vector<16x1xf32>
    %402 = vector.broadcast %401 : vector<16x1xf32> to vector<16x16xf32>
    %403 = arith.subf %399, %402 : vector<16x16xf32>
    %404 = math.exp %403 : vector<16x16xf32>
    %cst_28 = arith.constant dense<0.000000e+00> : vector<16xf32>
    %405 = vector.multi_reduction <add>, %404, %cst_28 [1] : vector<16x16xf32> to vector<16xf32>
    %406 = vector.shape_cast %405 : vector<16xf32> to vector<16x1xf32>
    %407 = tpu.reciprocal %406 {approx = true} : vector<16x1xf32> -> vector<16x1xf32>
    %408 = vector.broadcast %407 : vector<16x1xf32> to vector<16x16xf32>
    %409 = arith.mulf %404, %408 : vector<16x16xf32>
    %410 = vector.extract_strided_slice %15 {offsets = [0, 24], sizes = [16, 8], strides = [1, 1]} : vector<16x32xf32> to vector<16x8xf32>
    %cst_29 = arith.constant dense<0.000000e+00> : vector<16x8xf32>
    %411 = tpu.matmul %409, %410, %cst_29 {dimension_numbers = #tpu.dot_dimension_numbers<[1], [0], [0], [1], [0, 0, 1, 1], [], []>} : vector<16x16xf32>, vector<16x8xf32>, vector<16x8xf32> -> vector<16x8xf32>
    %412 = tpu.concatenate %117, %215, %313, %411 in 1 : vector<16x8xf32>, vector<16x8xf32>, vector<16x8xf32>, vector<16x8xf32> -> vector<16x32xf32>
    %413 = vector.broadcast %11 : vector<1x32xf32> to vector<16x32xf32>
    %414 = arith.addf %412, %413 : vector<16x32xf32>
    %c0_30 = arith.constant 0 : index
    %c0_31 = arith.constant 0 : index
    %415 = vector.load %arg7[%c0_30, %c0_31] : memref<32x8xf32, #tpu.memory_space<vmem>>, vector<32x8xf32>
    %c0_32 = arith.constant 0 : index
    %c0_33 = arith.constant 0 : index
    %416 = vector.load %arg8[%c0_32, %c0_33] : memref<1x8xf32, #tpu.memory_space<vmem>>, vector<1x8xf32>
    %c0_34 = arith.constant 0 : index
    %c0_35 = arith.constant 0 : index
    %417 = vector.load %arg9[%c0_34, %c0_35] : memref<4x1xf32, #tpu.memory_space<vmem>>, vector<4x1xf32>
    %c0_36 = arith.constant 0 : index
    %c0_37 = arith.constant 0 : index
    %418 = vector.load %arg10[%c0_36, %c0_37] : memref<1x4xf32, #tpu.memory_space<vmem>>, vector<1x4xf32>
    %c0_38 = arith.constant 0 : index
    %c0_39 = arith.constant 0 : index
    %419 = vector.load %arg11[%c0_38, %c0_39] : memref<1x4xf32, #tpu.memory_space<vmem>>, vector<1x4xf32>
    %cst_40 = arith.constant dense<0.000000e+00> : vector<16x8xf32>
    %420 = tpu.matmul %414, %415, %cst_40 {dimension_numbers = #tpu.dot_dimension_numbers<[1], [0], [0], [1], [0, 0, 1, 1], [], []>} : vector<16x32xf32>, vector<32x8xf32>, vector<16x8xf32> -> vector<16x8xf32>
    %421 = vector.broadcast %416 : vector<1x8xf32> to vector<16x8xf32>
    %422 = arith.addf %420, %421 : vector<16x8xf32>
    %423 = vector.extract_strided_slice %422 {offsets = [0, 0], sizes = [16, 4], strides = [1, 1]} : vector<16x8xf32> to vector<16x4xf32>
    %424 = vector.extract_strided_slice %422 {offsets = [0, 4], sizes = [16, 4], strides = [1, 1]} : vector<16x8xf32> to vector<16x4xf32>
    %425 = tpu.transpose %423, [1, 0] : vector<16x4xf32> -> vector<4x16xf32>
    %cst_41 = arith.constant dense<0.000000e+00> : vector<16x1xf32>
    %426 = tpu.matmul %424, %417, %cst_41 {dimension_numbers = #tpu.dot_dimension_numbers<[1], [0], [0], [1], [0, 0, 1, 1], [], []>} : vector<16x4xf32>, vector<4x1xf32>, vector<16x1xf32> -> vector<16x1xf32>
    %cst_42 = arith.constant dense<0.000000e+00> : vector<1x16xf32>
    %427 = tpu.matmul %418, %425, %cst_42 {dimension_numbers = #tpu.dot_dimension_numbers<[1], [0], [0], [1], [0, 0, 1, 1], [], []>} : vector<1x4xf32>, vector<4x16xf32>, vector<1x16xf32> -> vector<1x16xf32>
    %428 = vector.broadcast %426 : vector<16x1xf32> to vector<16x16xf32>
    %429 = vector.broadcast %427 : vector<1x16xf32> to vector<16x16xf32>
    %430 = arith.addf %428, %429 : vector<16x16xf32>
    %431 = vector.extract_strided_slice %424 {offsets = [0, 0], sizes = [16, 1], strides = [1, 1]} : vector<16x4xf32> to vector<16x1xf32>
    %432 = vector.extract_strided_slice %425 {offsets = [0, 0], sizes = [1, 16], strides = [1, 1]} : vector<4x16xf32> to vector<1x16xf32>
    %433 = vector.broadcast %431 : vector<16x1xf32> to vector<16x16xf32>
    %434 = vector.broadcast %432 : vector<1x16xf32> to vector<16x16xf32>
    %435 = arith.addf %433, %434 : vector<16x16xf32>
    %c0_43 = arith.constant 0 : index
    %436 = memref.load %arg13[%c0_43] : memref<4xf32, #tpu.memory_space<smem>>
    %437 = math.absf %435 : vector<16x16xf32>
    %438 = vector.broadcast %436 : f32 to vector<16x16xf32>
    %439 = arith.mulf %438, %437 : vector<16x16xf32>
    %440 = arith.addf %430, %439 : vector<16x16xf32>
    %441 = vector.extract_strided_slice %424 {offsets = [0, 1], sizes = [16, 1], strides = [1, 1]} : vector<16x4xf32> to vector<16x1xf32>
    %442 = vector.extract_strided_slice %425 {offsets = [1, 0], sizes = [1, 16], strides = [1, 1]} : vector<4x16xf32> to vector<1x16xf32>
    %443 = vector.broadcast %441 : vector<16x1xf32> to vector<16x16xf32>
    %444 = vector.broadcast %442 : vector<1x16xf32> to vector<16x16xf32>
    %445 = arith.addf %443, %444 : vector<16x16xf32>
    %c1_44 = arith.constant 1 : index
    %446 = memref.load %arg13[%c1_44] : memref<4xf32, #tpu.memory_space<smem>>
    %447 = math.absf %445 : vector<16x16xf32>
    %448 = vector.broadcast %446 : f32 to vector<16x16xf32>
    %449 = arith.mulf %448, %447 : vector<16x16xf32>
    %450 = arith.addf %440, %449 : vector<16x16xf32>
    %451 = vector.extract_strided_slice %424 {offsets = [0, 2], sizes = [16, 1], strides = [1, 1]} : vector<16x4xf32> to vector<16x1xf32>
    %452 = vector.extract_strided_slice %425 {offsets = [2, 0], sizes = [1, 16], strides = [1, 1]} : vector<4x16xf32> to vector<1x16xf32>
    %453 = vector.broadcast %451 : vector<16x1xf32> to vector<16x16xf32>
    %454 = vector.broadcast %452 : vector<1x16xf32> to vector<16x16xf32>
    %455 = arith.addf %453, %454 : vector<16x16xf32>
    %c2_45 = arith.constant 2 : index
    %456 = memref.load %arg13[%c2_45] : memref<4xf32, #tpu.memory_space<smem>>
    %457 = math.absf %455 : vector<16x16xf32>
    %458 = vector.broadcast %456 : f32 to vector<16x16xf32>
    %459 = arith.mulf %458, %457 : vector<16x16xf32>
    %460 = arith.addf %450, %459 : vector<16x16xf32>
    %461 = vector.extract_strided_slice %424 {offsets = [0, 3], sizes = [16, 1], strides = [1, 1]} : vector<16x4xf32> to vector<16x1xf32>
    %462 = vector.extract_strided_slice %425 {offsets = [3, 0], sizes = [1, 16], strides = [1, 1]} : vector<4x16xf32> to vector<1x16xf32>
    %463 = vector.broadcast %461 : vector<16x1xf32> to vector<16x16xf32>
    %464 = vector.broadcast %462 : vector<1x16xf32> to vector<16x16xf32>
    %465 = arith.addf %463, %464 : vector<16x16xf32>
    %c3_46 = arith.constant 3 : index
    %466 = memref.load %arg13[%c3_46] : memref<4xf32, #tpu.memory_space<smem>>
    %467 = math.absf %465 : vector<16x16xf32>
    %468 = vector.broadcast %466 : f32 to vector<16x16xf32>
    %469 = arith.mulf %468, %467 : vector<16x16xf32>
    %470 = arith.addf %460, %469 : vector<16x16xf32>
    %471 = arith.addf %470, %6 : vector<16x16xf32>
    %cst_47 = arith.constant dense<0xFF800000> : vector<16xf32>
    %472 = vector.multi_reduction <maximumf>, %471, %cst_47 [1] : vector<16x16xf32> to vector<16xf32>
    %473 = vector.shape_cast %472 : vector<16xf32> to vector<16x1xf32>
    %474 = vector.broadcast %473 : vector<16x1xf32> to vector<16x16xf32>
    %475 = arith.subf %471, %474 : vector<16x16xf32>
    %476 = math.exp %475 : vector<16x16xf32>
    %cst_48 = arith.constant dense<0.000000e+00> : vector<16xf32>
    %477 = vector.multi_reduction <add>, %476, %cst_48 [1] : vector<16x16xf32> to vector<16xf32>
    %478 = vector.shape_cast %477 : vector<16xf32> to vector<16x1xf32>
    %479 = tpu.reciprocal %478 {approx = true} : vector<16x1xf32> -> vector<16x1xf32>
    %480 = vector.broadcast %479 : vector<16x1xf32> to vector<16x16xf32>
    %481 = arith.mulf %476, %480 : vector<16x16xf32>
    %cst_49 = arith.constant dense<0.000000e+00> : vector<16x4xf32>
    %482 = tpu.matmul %481, %423, %cst_49 {dimension_numbers = #tpu.dot_dimension_numbers<[1], [0], [0], [1], [0, 0, 1, 1], [], []>} : vector<16x16xf32>, vector<16x4xf32>, vector<16x4xf32> -> vector<16x4xf32>
    %cst_50 = arith.constant 1.000000e+00 : f32
    %483 = vector.broadcast %cst_50 : f32 to vector<16x4xf32>
    %484 = arith.mulf %482, %483 : vector<16x4xf32>
    %485 = vector.broadcast %419 : vector<1x4xf32> to vector<16x4xf32>
    %486 = arith.addf %484, %485 : vector<16x4xf32>
    %487 = arith.mulf %486, %486 : vector<16x4xf32>
    %cst_51 = arith.constant dense<0.000000e+00> : vector<16xf32>
    %488 = vector.multi_reduction <add>, %487, %cst_51 [1] : vector<16x4xf32> to vector<16xf32>
    %489 = vector.shape_cast %488 : vector<16xf32> to vector<16x1xf32>
    %cst_52 = arith.constant 1.000000e-24 : f32
    %490 = vector.broadcast %cst_52 : f32 to vector<16x1xf32>
    %491 = arith.maximumf %489, %490 : vector<16x1xf32>
    %492 = math.rsqrt %491 : vector<16x1xf32>
    %493 = vector.broadcast %492 : vector<16x1xf32> to vector<16x4xf32>
    %494 = arith.mulf %486, %493 : vector<16x4xf32>
    %c0_53 = arith.constant 0 : index
    %c0_54 = arith.constant 0 : index
    %495 = vector.load %arg15[%c0_53, %c0_54] : memref<16x4xf32, #tpu.memory_space<vmem>>, vector<16x4xf32>
    tpu.vector_store %arg15[%c0_53, %c0_54], %494 {strides = array<i32>} : memref<16x4xf32, #tpu.memory_space<vmem>>, vector<16x4xf32>,
    "tpu.trace_start"() <{level = 10 : i32, message = "nd,md->nm"}> : () -> ()
    %cst_55 = arith.constant dense<0.000000e+00> : vector<16x16xf32>
    %496 = tpu.matmul %494, %494, %cst_55 {dimension_numbers = #tpu.dot_dimension_numbers<[1], [1], [0], [0], [0, 0, 1, 0], [], []>} : vector<16x4xf32>, vector<16x4xf32>, vector<16x16xf32> -> vector<16x16xf32>
    "tpu.trace_stop"() : () -> ()
    %497 = arith.negf %496 : vector<16x16xf32>
    %498 = math.exp %497 : vector<16x16xf32>
    %cst_56 = arith.constant 1.000000e+00 : f32
    %499 = vector.broadcast %cst_56 : f32 to vector<16x16xf32>
    %500 = arith.addf %499, %498 : vector<16x16xf32>
    %501 = arith.divf %499, %500 : vector<16x16xf32>
    %c0_57 = arith.constant 0 : index
    %c0_58 = arith.constant 0 : index
    %502 = vector.load %arg14[%c0_57, %c0_58] : memref<16x16xf32, #tpu.memory_space<vmem>>, vector<16x16xf32>
    tpu.vector_store %arg14[%c0_57, %c0_58], %501 {strides = array<i32>} : memref<16x16xf32, #tpu.memory_space<vmem>>, vector<16x16xf32>,
    return
  }
}

</mosaic_0001>

<bundles_post_ra>
// kernel: tpu_custom_call.1
= control target key start
LH: loop header
LB: loop body
LE: loop exit
PB: predicated region body
PF: predicated region fallthrough
CT: control target
= control target key end

     0   :  { %s2988_s0 = inlined_call_operand.vmem [shape: f32[16,4], index: 0, kind: input, shape index: {}]   ;;  %s2989_s1 = inlined_call_operand.vmem [shape: bf16[16,16], index: 1, kind: input, shape index: {}]   ;;  %s2990_s2 = inlined_call_operand.vmem [shape: f32[4,64], index: 2, kind: input, shape index: {}]   ;;  %s2991_s3 = inlined_call_operand.vmem [shape: f32[1,64], index: 3, kind: input, shape index: {}]   ;;  %s2992_s4 = inlined_call_operand.vmem [shape: f32[32,4], index: 4, kind: input, shape index: {}]   ;;  %s2993_s5 = inlined_call_operand.vmem [shape: f32[4,32], index: 5, kind: input, shape index: {}]   ;;  %s2994_s6 = inlined_call_operand.vmem [shape: f32[1,32], index: 6, kind: input, shape index: {}]   ;;  %s2995_s7 = inlined_call_operand.vmem [shape: f32[32,8], index: 7, kind: input, shape index: {}]   ;;  %s2996_s8 = inlined_call_operand.vmem [shape: f32[1,8], index: 8, kind: input, shape index: {}]   ;;  %s2997_s9 = inlined_call_operand.vmem [shape: f32[4,1], index: 9, kind: input, shape index: {}]   ;;  %s2998_s10 = inlined_call_operand.vmem [shape: f32[1,4], index: 10, kind: input, shape index: {}]   ;;  %s2999_s11 = inlined_call_operand.vmem [shape: f32[1,4], index: 11, kind: input, shape index: {}]   ;;  %s3000_s12 = inlined_call_operand.vmem [shape: f32[32], index: 12, kind: input, shape index: {}]   ;;  %s3001_s13 = inlined_call_operand.vmem [shape: f32[4], index: 13, kind: input, shape index: {}]   ;;  %s3002_s14 = inlined_call_operand.hbm [shape: f32[16,16], index: 14, kind: output, shape index: {0}]   ;;  %s3003_s15 = inlined_call_operand.vmem [shape: f32[16,4], index: 15, kind: output, shape index: {1}]  }
   0x1   :  { %3030 = sst [smem:[#allocation34_spill]] %s3002_s14 }
   0x2   :  { %3031 = sst [smem:[#allocation35_spill]] %s3003_s15 }
   0x3   :  { %21 = vsyncpa [#allocation4], 0 }
   0x4   :  { %22 = vsyncpa [#allocation6], 0 }
   0x5   :  { %23 = vsyncpa [#allocation3], 0  ;;  %s53_s20 = sshll.u32 %s3000_s12, 4  ;;  %s62_s23 = sshll.u32 %s3001_s13, 4  ;;  %s54_s20 = int_to_ptr.vmem [resolvable:$true] %s53_s20  ;;  %s63_s23 = int_to_ptr.vmem [resolvable:$true] %s62_s23 }
   0x6   :  { %s1878_s24 = smov [#allocation2]   ;;  %s1879_s25 = smov [#allocation5]  }
   0x7   :  { %56 = dma.vmem_to_smem %s54_s20, 16, %s1878_s24, [#allocation4]  }
   0x8   :  { %65 = dma.vmem_to_smem %s63_s23, 16, %s1879_s25, [#allocation6]  }
   0x9   :  { %1872 = dma.done.wait [#allocation4], 16  }
   0xa   :  { %1873 = vsyncadd [#allocation4], 4294967280 }
   0xb   :  { %1874 = dma.done.wait [#allocation6], 16  }
   0xc   :  { %1875 = vsyncadd [#allocation6], 4294967280 }
   0xd   :  { %74 = sfence }
   0xe   :  { %v85_v0 = vld [vmem:[%s2990_s2] sm:$0xf]  ;;  %vm103_vm0 = vcmask 1043456   ;;  %vm96_vm1 = vcmask 31744   ;;  %v76_v2 = vld [vmem:[%s2988_s0 + $0x8] sm:$0xff]  ;;  %v1880_v3 = vmov 34  }
   0xf   :  { %v75_v1 = vld [vmem:[%s2988_s0] sm:$0xff]  ;;  %1549 = vmatpush.msk.msra.mxu0 %vm103_vm0, %v85_v0  ;;  %1675 = vset.pattern.permute.xlu1 %v1880_v3  ;;  %v1881_v4 = vmov 32   ;;  %v1882_v5 = vmov 36   ;;  %s1883_s0 = smov 96   ;;  %v1884_v11 = vmov 44   ;;  %v1885_v12 = vmov 33  }
  0x10   :  { %1550 = vmatmul.msk.f32.vlgmr.msra.gmra.mxu0 %vm96_vm1, %v75_v1  ;;  %1673 = vset.pattern.permute.xlu2 %v1881_v4  ;;  %v1768_v6 = vld [vmem:[%s2991_s3] ss:$0 sm:$0xff]  ;;  %v1886_v13 = vmov 57   ;;  %v1887_v14 = vmov 35   ;;  %v1888_v15 = vmov 58   ;;  %v1889_v16 = vmov 37  }
  0x11   :  { %1677 = vset.pattern.permute.xlu0 %v1882_v5  ;;  %v1890_v17 = vmov 38   ;;  %v1891_v18 = vmov 59   ;;  %v1892_v19 = vmov 39   ;;  %v1893_v20 = vmov 40   ;;  %v90_v23 = vld [vmem:[%s2992_s4 + $0x18] sm:$0xff]  ;;  %v89_v24 = vld [vmem:[%s2992_s4 + $0x10] sm:$0xff] }
  0x12   :  { %v1894_v21 = vmov 41   ;;  %v1895_v22 = vmov 56   ;;  %185 = vmatpush.msrb.mxu0 %v90_v23  ;;  %1616 = vmatpush.msra.mxu1 %v90_v23  ;;  %v1896_v25 = vmov 60   ;;  %v88_v26 = vld [vmem:[%s2992_s4 + $0x8] sm:$0xff]  ;;  %v1897_v27 = vmov 42   ;;  %v87_v28 = vld [vmem:[%s2992_s4] sm:$0xff] }
  0x13   :  { %v1898_v29 = vmov 46   ;;  %v1899_v30 = vmov 43   ;;  %v1900_v32 = vmov 52   ;;  %v1901_v33 = vmov 48   ;;  %s2362_s24 = sld [smem:[#allocation2 + $0x7]] }
  0x14   :  { %186 = vmatpush.msrb.mxu0 %v89_v24  ;;  %1617 = vmatpush.msra.mxu1 %v89_v24  ;;  %v1902_v35 = vmov 53   ;;  %v1903_v36 = vmov 49   ;;  %vm168_vm2 = vcmask 261120   ;;  %v1904_v38 = vmov 47   ;;  %s2368_s25 = sld [smem:[#allocation2]] }
  0x15   :  { %v1905_v49 = vmov 45   ;;  %v1906_v52 = vmov 51   ;;  %v1907_v54 = vmov 62   ;;  %v1908_v57 = vmov 50   ;;  %s2370_s26 = sld [smem:[#allocation2 + $0x1]] }
  0x16   :  { %187 = vmatpush.msrb.mxu0 %v88_v26  ;;  %1618 = vmatpush.msra.mxu1 %v88_v26  ;;  %v1909_v58 = vmov 63   ;;  %v3004_v61 = vmov 0   ;;  %v1911_v1 = vmov 61   ;;  %s2372_s27 = sld [smem:[#allocation2 + $0xf]]  ;;  %vm386_vm3 = vcmask 130048  }
  0x17   :  { %s2374_s12 = sld [smem:[#allocation2 + $0x8]]  ;;  %vm1128_vm4 = vcmask 64512   ;;  %vm1133_vm5 = vcmask 195584  }
  0x18   :  { %1551 = vmatmul.msk.f32.gmra.mxu0 %vm96_vm1, %v76_v2  ;;  %1619 = vmatpush.msra.mxu1 %v87_v28  ;;  %s2376_s28 = sld [smem:[#allocation2 + $0xc]] }
  0x19   :  { %188 = vmatpush.msrb.mxu0 %v87_v28  ;;  %s2380_s13 = sld [smem:[#allocation2 + $0x9]] }
  0x1a   :  { %s2384_s29 = sld [smem:[#allocation2 + $0xe]] }
  0x1b   :  { %s2386_s2 = sld [smem:[#allocation2 + $0xa]] }
  0x1c   :  { %s2388_s30 = sld [smem:[#allocation2 + $0xb]] }
  0x1d   :  { %s2396_s3 = sld [smem:[#allocation2 + $0x3]] }
  0x1e   :  { %s2398_s16 = sld [smem:[#allocation2 + $0x10]] }
  0x1f   :  { %s2400_s17 = sld [smem:[#allocation2 + $0x11]] }
  0x20   :  { %s2402_s18 = sld [smem:[#allocation2 + $0xd]] }
  0x21   :  { %s2404_s19 = sld [smem:[#allocation2 + $0x19]] }
  0x22   :  { %s2408_s20 = sld [smem:[#allocation2 + $0x18]] }
  0x23   :  { %s2413_s21 = sld [smem:[#allocation2 + $0x1a]] }
  0x24   :  { %s2417_s22 = sld [smem:[#allocation2 + $0x1b]] }
  0x25   :  { %s2427_s4 = sld [smem:[#allocation2 + $0x1c]] }
  0x26   :  { %s2448_s23 = sld [smem:[#allocation2 + $0x13]] }
  0x27   :  { %s2491_s14 = sld [smem:[#allocation2 + $0x15]] }
  0x28   :  { %s2540_s15 = sld [smem:[#allocation2 + $0x5]] }
  0x8d   :  { %v124_v7 = vpop.f32.mrf.mxu0 }
  0x8e   :  { %v2033_v8 = vadd.f32 %v1768_v6, %v124_v7 }
  0x90   :  { %3032 = vst [vmem:[#allocation11_spill] sm:$0xff] %v2033_v8  ;;  %271 = vperm.xlu1 %1675, %v2033_v8   ;;  %233 = vperm.xlu2 %1673, %v2033_v8  }
  0x91   :  { %164 = vrot.lane.b32.xlu0 %v2033_v8, %s1883_s0 }
  0x95   :  { %v127_v9 = vpop.f32.mrf.mxu0 }
  0x96   :  { %v2038_v10 = vadd.f32 %v1768_v6, %v127_v9 }
  0x98   :  { %3033 = vst [vmem:[#allocation12_spill] sm:$0xff] %v2038_v10  ;;  %429 = vmatpush.msra.mxu3 %v2038_v10  ;;  %1689 = vset.pattern.permute.xlu1 %v1884_v11 }
  0x99   :  { %1674 = vset.pattern.permute.xlu2 %v1885_v12  ;;  %309 = vperm.xlu0 %1677, %v2033_v8  }
  0x9a   :  { %526 = vperm.xlu1 %1689, %v2033_v8   ;;  %252 = vperm.xlu2 %1674, %v2033_v8  }
  0x9b   :  { %430 = vmatpush.msra.mxu3 %v2033_v8 }
  0xa1   :  { %1685 = vset.pattern.permute.xlu0 %v1886_v13 }
  0xa2   :  { %1676 = vset.pattern.permute.xlu2 %v1887_v14  ;;  %913 = vperm.xlu0 %1685, %v2033_v8  }
  0xa3   :  { %290 = vperm.xlu2 %1676, %v2033_v8  }
  0xaa   :  { %1687 = vset.pattern.permute.xlu0 %v1888_v15 }
  0xab   :  { %1678 = vset.pattern.permute.xlu2 %v1889_v16  ;;  %932 = vperm.xlu0 %1687, %v2033_v8  }
  0xac   :  { %328 = vperm.xlu2 %1678, %v2033_v8  }
  0xb3   :  { %166 = vrot.lane.b32.xlu0 %v2038_v10, %s1883_s0  ;;  %s2394_s0 = sld [smem:[#allocation2 + $0x2]] }
  0xb4   :  { %1679 = vset.pattern.permute.xlu2 %v1890_v17  ;;  %1690 = vset.pattern.permute.xlu0 %v1891_v18 }
  0xb5   :  { %347 = vperm.xlu2 %1679, %v2033_v8  }
  0xbb   :  { %951 = vperm.xlu0 %1690, %v2033_v8  }
  0xbd   :  { %1680 = vset.pattern.permute.xlu2 %v1892_v19 }
  0xbe   :  { %366 = vperm.xlu2 %1680, %v2033_v8  }
  0xc3   :  { %1695 = vset.pattern.permute.xlu0 %v1887_v14 }
  0xc4   :  { %294 = vperm.xlu0 %1695, %v2038_v10  }
  0xc6   :  { %1681 = vset.pattern.permute.xlu2 %v1893_v20 }
  0xc7   :  { %450 = vperm.xlu2 %1681, %v2033_v8  }
  0xcc   :  { %1696 = vset.pattern.permute.xlu0 %v1882_v5 }
  0xcd   :  { %313 = vperm.xlu0 %1696, %v2038_v10  }
  0xcf   :  { %130 = vxpose.xlu1.b32.start [1/2] (short) (narrow) %v2033_v8, 32  ;;  %1682 = vset.pattern.permute.xlu2 %v1894_v21 }
  0xd0   :  { %469 = vperm.xlu2 %1682, %v2033_v8  }
  0xd5   :  { %1697 = vset.pattern.permute.xlu0 %v1889_v16 }
  0xd6   :  { %332 = vperm.xlu0 %1697, %v2038_v10  }
  0xd7   :  { %131 = vxpose.xlu1.b32.end [2/2] (short) (narrow) %v2038_v10, 32 }
  0xd8   :  { %1683 = vset.pattern.permute.xlu2 %v1895_v22 }
  0xd9   :  { %894 = vperm.xlu2 %1683, %v2033_v8  }
  0xde   :  { %1704 = vset.pattern.permute.xlu0 %v1896_v25 }
  0xdf   :  { %970 = vperm.xlu0 %1704, %v2033_v8  }
  0xe1   :  { %1684 = vset.pattern.permute.xlu2 %v1897_v27 }
  0xe2   :  { %488 = vperm.xlu2 %1684, %v2033_v8  }
  0xe7   :  { %1707 = vset.pattern.permute.xlu0 %v1898_v29 }
  0xe8   :  { %564 = vperm.xlu0 %1707, %v2033_v8  }
  0xea   :  { %1686 = vset.pattern.permute.xlu2 %v1899_v30  ;;  %v2090_v31 = vpop.permute.xlu2 %233 }
  0xeb   :  { %507 = vperm.xlu2 %1686, %v2033_v8  }
  0xf0   :  { %1715 = vset.pattern.permute.xlu0 %v1900_v32 }
  0xf1   :  { %748 = vperm.xlu0 %1715, %v2033_v8  }
  0xf3   :  { %1688 = vset.pattern.permute.xlu2 %v1901_v33 }
  0xf4   :  { %672 = vperm.xlu2 %1688, %v2033_v8   ;;  %v2097_v34 = vpop.permute.xlu2 %252 }
  0xf9   :  { %1720 = vset.pattern.permute.xlu0 %v1902_v35 }
  0xfa   :  { %767 = vperm.xlu0 %1720, %v2033_v8  }
  0xfc   :  { %1691 = vset.pattern.permute.xlu2 %v1903_v36 }
  0xfd   :  { %691 = vperm.xlu2 %1691, %v2033_v8   ;;  %v2103_v37 = vpop.permute.xlu2 %290 }
 0x102   :  { %1721 = vset.pattern.permute.xlu0 %v1904_v38  ;;  %v2163_v60 = vpop.permute.xlu1 %271 }
 0x103   :  { %583 = vperm.xlu0 %1721, %v2033_v8   ;;  %v165_v39 = vpop.permute.xlu0 %164 }
 0x104   :  { %1552 = vmatmul.msk.f32.vlgmr.msrb.gmra.mxu0 %vm168_vm2, %v165_v39 }
 0x105   :  { %1692 = vset.pattern.permute.xlu2 %v1881_v4 }
 0x106   :  { %237 = vperm.xlu2 %1692, %v2038_v10   ;;  %v2109_v40 = vpop.permute.xlu2 %328 }
 0x10b   :  { %587 = vperm.xlu0 %1721, %v2038_v10   ;;  %v2112_v41 = vpop.permute.xlu0 %309 }
 0x10c   :  { %v527_v0 = vpop.permute.xlu1 %526 }
 0x10e   :  { %1693 = vset.pattern.permute.xlu2 %v1885_v12 }
 0x10f   :  { %256 = vperm.xlu2 %1693, %v2038_v10   ;;  %v2116_v42 = vpop.permute.xlu2 %347 }
 0x113   :  { %1729 = vset.pattern.permute.xlu0 %v3004_v61 }
 0x114   :  { %v2118_v43 = vpop.permute.xlu0 %913 }
 0x115   :  { %3034 = vst [vmem:[#allocation13_spill] sm:$0xff] %v2118_v43 }
 0x117   :  { %1694 = vset.pattern.permute.xlu2 %v1880_v3 }
 0x118   :  { %275 = vperm.xlu2 %1694, %v2038_v10   ;;  %v2122_v44 = vpop.permute.xlu2 %366 }
 0x11d   :  { %v2124_v45 = vpop.permute.xlu0 %932 }
 0x11e   :  { %3035 = vst [vmem:[#allocation14_spill] sm:$0xff] %v2124_v45 }
 0x120   :  { %1698 = vset.pattern.permute.xlu2 %v1890_v17 }
 0x121   :  { %351 = vperm.xlu2 %1698, %v2038_v10   ;;  %v2128_v46 = vpop.permute.xlu2 %450 }
 0x125   :  { %v167_v47 = vpop.permute.xlu0 %166 }
 0x126   :  { %1553 = vmatmul.msk.f32.vlgmr.msra.gmra.mxu1 %vm168_vm2, %v167_v47 }
 0x129   :  { %1700 = vset.pattern.permute.xlu2 %v1893_v20 }
 0x12a   :  { %454 = vperm.xlu2 %1700, %v2038_v10   ;;  %v2133_v48 = vpop.permute.xlu2 %469  ;;  %1699 = vset.pattern.permute.xlu1 %v1892_v19 }
 0x12d   :  { %v2168_v62 = vpop.permute.xlu0 %951 }
 0x12e   :  { %3037 = vst [vmem:[#allocation16_spill] sm:$0xff] %v2168_v62 }
 0x132   :  { %1701 = vset.pattern.permute.xlu2 %v1905_v49 }
 0x133   :  { %545 = vperm.xlu2 %1701, %v2033_v8   ;;  %v2137_v50 = vpop.permute.xlu2 %894 }
 0x134   :  { %3036 = vst [vmem:[#allocation15_spill] sm:$0xff] %v2137_v50 }
 0x136   :  { %v2173_v2 = vpop.permute.xlu0 %294 }
 0x13b   :  { %1708 = vset.pattern.permute.xlu2 %v1886_v13 }
 0x13c   :  { %917 = vperm.xlu2 %1708, %v2038_v10   ;;  %v2141_v51 = vpop.permute.xlu2 %488 }
 0x13f   :  { %v2196_v13 = vpop.permute.xlu0 %313 }
 0x141   :  { %370 = vperm.xlu1 %1699, %v2038_v10  }
 0x144   :  { %1710 = vset.pattern.permute.xlu2 %v1906_v52 }
 0x145   :  { %729 = vperm.xlu2 %1710, %v2033_v8   ;;  %v2145_v53 = vpop.permute.xlu2 %507 }
 0x148   :  { %v2232_v38 = vpop.permute.xlu0 %332 }
 0x149   :  { %1702 = vset.pattern.permute.xlu1 %v1894_v21 }
 0x14a   :  { %473 = vperm.xlu1 %1702, %v2038_v10  }
 0x14d   :  { %1713 = vset.pattern.permute.xlu2 %v1907_v54 }
 0x14e   :  { %1008 = vperm.xlu2 %1713, %v2033_v8   ;;  %v2151_v55 = vpop.permute.xlu2 %672 }
 0x152   :  { %1703 = vset.pattern.permute.xlu1 %v1895_v22 }
 0x153   :  { %898 = vperm.xlu1 %1703, %v2038_v10  }
 0x156   :  { %1716 = vset.pattern.permute.xlu2 %v1884_v11 }
 0x157   :  { %530 = vperm.xlu2 %1716, %v2038_v10   ;;  %v2157_v56 = vpop.permute.xlu2 %691 }
 0x15b   :  { %1705 = vset.pattern.permute.xlu1 %v1908_v57 }
 0x15c   :  { %710 = vperm.xlu1 %1705, %v2033_v8  }
 0x15f   :  { %1718 = vset.pattern.permute.xlu2 %v1909_v58 }
 0x160   :  { %1027 = vperm.xlu2 %1718, %v2033_v8   ;;  %v238_v59 = vpop.permute.xlu2 %237 }
 0x164   :  { %1706 = vset.pattern.permute.xlu1 %v1897_v27 }
 0x165   :  { %492 = vperm.xlu1 %1706, %v2038_v10  }
 0x168   :  { %1722 = vset.pattern.permute.xlu2 %v1905_v49 }
 0x169   :  { %549 = vperm.xlu2 %1722, %v2038_v10   ;;  %v257_v63 = vpop.permute.xlu2 %256 }
 0x16d   :  { %1709 = vset.pattern.permute.xlu1 %v1911_v1 }
 0x16e   :  { %989 = vperm.xlu1 %1709, %v2033_v8  }
 0x171   :  { %1725 = vset.pattern.permute.xlu2 %v1898_v29 }
 0x172   :  { %568 = vperm.xlu2 %1725, %v2038_v10   ;;  %v276_v3 = vpop.permute.xlu2 %275 }
 0x173   :  { %v2177_v4 = vpop.trf.xlu1 }
 0x174   :  { %v3020_v5 = vperm.slane %v2177_v4, 0  ;;  %v3019_v6 = vperm.slane %v2177_v4, 1  ;;  %v3009_v7 = vperm.slane %v2177_v4, 2  ;;  %v354_v14 = vperm.slane %v2177_v4, 6 }
 0x175   :  { %v3047_v43 = vperm.slane %v2177_v4, 1 }
 0x176   :  { %1711 = vset.pattern.permute.xlu1 %v1899_v30  ;;  %v2185_v9 = vadd.f32 %v3020_v5, %v238_v59  ;;  %v2190_v11 = vadd.f32 %v3019_v6, %v257_v63  ;;  %v2194_v12 = vadd.f32 %v3009_v7, %v276_v3  ;;  %v1913_v63 = vmov 2   ;;  %v91_v3 = vld [vmem:[%s2993_s5] sm:$0xf]  ;;  %s2360_s5 = sld [smem:[#allocation2 + $0x6]] }
 0x177   :  { %511 = vperm.xlu1 %1711, %v2038_v10   ;;  %v246_v5 = vstv %s2368_s25  ;;  %v260_v50 = vadd.f32 %v3047_v43, %v2097_v34  ;;  %s2480_s25 = sld [smem:[#allocation2 + $0x14]] }
 0x17a   :  { %1727 = vset.pattern.permute.xlu2 %v1906_v52 }
 0x17b   :  { %v2199_v16 = vpop.trf.xlu1  ;;  %733 = vperm.xlu2 %1727, %v2038_v10   ;;  %v352_v17 = vpop.permute.xlu2 %351 }
 0x17c   :  { %v2204_v19 = vadd.f32 %v354_v14, %v352_v17  ;;  %v533_v20 = vperm.slane %v2199_v16, 4  ;;  %v495_v21 = vperm.slane %v2199_v16, 2  ;;  %v514_v26 = vperm.slane %v2199_v16, 3 }
 0x17d   :  { %v3013_v28 = vperm.slane %v2199_v16, 0  ;;  %v590_v62 = vperm.slane %v2199_v16, 7 }
 0x17e   :  { %v2211_v22 = vadd.f32 %v533_v20, %v527_v0  ;;  %v2219_v24 = vadd.f32 %v495_v21, %v2141_v51  ;;  %v2230_v30 = vadd.f32 %v514_v26, %v2145_v53  ;;  %v552_v53 = vperm.slane %v2199_v16, 5 }
 0x17f   :  { %1712 = vset.pattern.permute.xlu1 %v1888_v15  ;;  %v1912_v15 = vmov 1  }
 0x180   :  { %936 = vperm.xlu1 %1712, %v2038_v10  }
 0x181   :  { %v2214_v23 = vpop.f32.mrf.mxu0 }
 0x182   :  { %221 = vperm.xlu0 %1729, %v2214_v23  }
 0x183   :  { %v2223_v27 = vpop.trf.xlu1  ;;  %1730 = vset.pattern.permute.xlu2 %v1912_v15 }
 0x184   :  { %v455_v29 = vpop.permute.xlu2 %454  ;;  %439 = vperm.xlu2 %1730, %v2214_v23   ;;  %v3011_v47 = vperm.slane %v2223_v27, 0  ;;  %v3008_v49 = vperm.slane %v2223_v27, 1 }
 0x185   :  { %v2236_v39 = vadd.f32 %v3013_v28, %v455_v29 }
 0x186   :  { %v2243_v51 = vadd.f32 %v3011_v47, %v2151_v55  ;;  %v2249_v52 = vadd.f32 %v3008_v49, %v2157_v56  ;;  %v971_v56 = vpop.permute.xlu0 %970  ;;  %v3021_v49 = vperm.slane %v2177_v4, 7 }
 0x188   :  { %1714 = vset.pattern.permute.xlu1 %v1901_v33 }
 0x189   :  { %676 = vperm.xlu1 %1714, %v2038_v10  }
 0x18b   :  { %v2253_v59 = vpop.trf.xlu1 }
 0x18c   :  { %211 = vmatpush.msra.mxu2 %v2253_v59  ;;  %1732 = vset.pattern.permute.xlu2 %v1913_v63  ;;  %v3007_v55 = vperm.slane %v2253_v59, 4  ;;  %v3006_v29 = vperm.slane %v2253_v59, 1 }
 0x18d   :  { %v546_v0 = vpop.permute.xlu2 %545  ;;  %661 = vperm.xlu2 %1732, %v2214_v23  }
 0x18e   :  { %v2259_v33 = vadd.f32 %v552_v53, %v546_v0  ;;  %212 = vmatpush.msra.mxu2 %v2223_v27  ;;  %v2269_v17 = vadd.f32 %v3007_v55, %v971_v56 }
 0x190   :  { %213 = vmatpush.msra.mxu2 %v2199_v16  ;;  %3038 = vst [vmem:[#allocation17_spill] sm:$0xff] %v2269_v17 }
 0x191   :  { %1717 = vset.pattern.permute.xlu1 %v1891_v18  ;;  %v736_v18 = vperm.slane %v2223_v27, 3 }
 0x192   :  { %955 = vperm.xlu1 %1717, %v2038_v10   ;;  %214 = vmatpush.msra.mxu2 %v2177_v4 }
 0x193   :  { %1554 = vmatmul.msk.f32.vlgmr.msra.gmra.mxu2 %vm168_vm2, %v91_v3 }
 0x195   :  { %1734 = vset.pattern.permute.xlu2 %v1907_v54 }
 0x196   :  { %v918_v0 = vpop.permute.xlu2 %917  ;;  %1012 = vperm.xlu2 %1734, %v2038_v10  }
 0x197   :  { %v2280_v61 = vadd.f32 %v3006_v29, %v918_v0  ;;  %v1914_v0 = vmov 55  }
 0x19a   :  { %1719 = vset.pattern.permute.xlu1 %v1903_v36  ;;  %v3010_v36 = vperm.slane %v2253_v59, 6 }
 0x19b   :  { %695 = vperm.xlu1 %1719, %v2038_v10  }
 0x19e   :  { %1736 = vset.pattern.permute.xlu2 %v1909_v58 }
 0x19f   :  { %v730_v56 = vpop.permute.xlu2 %729  ;;  %1031 = vperm.xlu2 %1736, %v2038_v10  }
 0x1a0   :  { %v2287_v54 = vadd.f32 %v736_v18, %v730_v56  ;;  %v1915_v56 = vmov 54  }
 0x1a3   :  { %1723 = vset.pattern.permute.xlu1 %v1896_v25  ;;  %v193_v3 = vpop.f32.mrf.mxu1 }
 0x1a4   :  { %974 = vperm.xlu1 %1723, %v2038_v10   ;;  %226 = vperm.xlu0 %1729, %v193_v3  }
 0x1a7   :  { %1738 = vset.pattern.permute.xlu2 %v1914_v0 }
 0x1a8   :  { %v1009_v29 = vpop.permute.xlu2 %1008  ;;  %809 = vperm.xlu2 %1738, %v2038_v10  }
 0x1a9   :  { %v2295_v58 = vadd.f32 %v3010_v36, %v1009_v29 }
 0x1ab   :  { %3039 = vst [vmem:[#allocation18_spill] sm:$0xff] %v2295_v58 }
 0x1ac   :  { %1724 = vset.pattern.permute.xlu1 %v1908_v57  ;;  %1733 = vset.pattern.permute.xlu0 %v1915_v56  ;;  %v1916_v57 = vmov 3  }
 0x1ad   :  { %714 = vperm.xlu1 %1724, %v2038_v10   ;;  %786 = vperm.xlu0 %1733, %v2033_v8  }
 0x1b0   :  { %1739 = vset.pattern.permute.xlu2 %v1912_v15  ;;  %v3012_v15 = vperm.slane %v2253_v59, 7 }
 0x1b1   :  { %v531_v25 = vpop.permute.xlu2 %530  ;;  %443 = vperm.xlu2 %1739, %v193_v3  }
 0x1b2   :  { %v2302_v55 = vadd.f32 %v533_v20, %v531_v25  ;;  %v3018_v25 = vperm.slane %v2199_v16, 1 }
 0x1b3   :  { %v371_v7 = vpop.permute.xlu1 %370 }
 0x1b4   :  { %v2307_v29 = vadd.f32 %v3021_v49, %v371_v7  ;;  %v3046_v49 = vperm.slane %v2177_v4, 0 }
 0x1b5   :  { %1726 = vset.pattern.permute.xlu1 %v1911_v1  ;;  %790 = vperm.xlu0 %1733, %v2038_v10  }
 0x1b6   :  { %993 = vperm.xlu1 %1726, %v2038_v10   ;;  %v241_v17 = vadd.f32 %v3046_v49, %v2090_v31  ;;  %v297_v31 = vperm.slane %v2177_v4, 3 }
 0x1b9   :  { %1740 = vset.pattern.permute.xlu2 %v1916_v57 }
 0x1ba   :  { %v1028_v56 = vpop.permute.xlu2 %1027  ;;  %887 = vperm.xlu2 %1740, %v193_v3  }
 0x1bb   :  { %v2315_v20 = vadd.f32 %v3012_v15, %v1028_v56  ;;  %v3014_v56 = vperm.slane %v2253_v59, 0 }
 0x1bc   :  { %v474_v7 = vpop.permute.xlu1 %473 }
 0x1bd   :  { %3040 = vst [vmem:[#allocation19_spill] sm:$0xff] %v2315_v20  ;;  %v2320_v1 = vadd.f32 %v3018_v25, %v474_v7  ;;  %v3045_v25 = vperm.slane %v2177_v4, 7 }
 0x1be   :  { %1728 = vset.pattern.permute.xlu1 %v1914_v0  ;;  %v3016_v0 = vperm.slane %v2199_v16, 6 }
 0x1bf   :  { %805 = vperm.xlu1 %1728, %v2033_v8   ;;  %v355_v8 = vadd.f32 %v354_v14, %v2116_v42  ;;  %v374_v6 = vadd.f32 %v3045_v25, %v2122_v44  ;;  %v245_v42 = vand.u32 2147483647, %v2185_v9  ;;  %v3054_v9 = vperm.slane %v2177_v4, 2 }
 0x1c1   :  { %v358_v44 = vand.u32 2147483647, %v355_v8  ;;  %v377_v49 = vand.u32 2147483647, %v374_v6  ;;  %v3049_v8 = vperm.slane %v2199_v16, 0  ;;  %v3050_v6 = vperm.slane %v2199_v16, 1 }
 0x1c2   :  { %1741 = vset.pattern.permute.xlu2 %v1913_v63 }
 0x1c3   :  { %v550_v36 = vpop.permute.xlu2 %549  ;;  %665 = vperm.xlu2 %1741, %v193_v3   ;;  %v458_v43 = vadd.f32 %v3049_v8, %v2128_v46  ;;  %v477_v14 = vadd.f32 %v3050_v6, %v2133_v48  ;;  %v279_v48 = vadd.f32 %v3054_v9, %v2163_v60  ;;  %v264_v60 = vand.u32 2147483647, %v2190_v11 }
 0x1c4   :  { %v2325_v47 = vadd.f32 %v552_v53, %v550_v36  ;;  %v3015_v53 = vperm.slane %v2223_v27, 2  ;;  %v3066_v11 = vstv %s2380_s13  ;;  %v3069_v46 = vstv %s2370_s26 }
 0x1c5   :  { %v899_v15 = vpop.permute.xlu1 %898  ;;  %v461_v6 = vand.u32 2147483647, %v458_v43  ;;  %v282_v9 = vand.u32 2147483647, %v279_v48  ;;  %v283_v43 = vand.u32 2147483647, %v2194_v12 }
 0x1c6   :  { %v2330_v28 = vadd.f32 %v3014_v56, %v899_v15  ;;  %v462_v12 = vand.u32 2147483647, %v2236_v39  ;;  %v518_v48 = vand.u32 2147483647, %v2230_v30  ;;  %v298_v30 = vadd.f32 %v297_v31, %v2103_v37 }
 0x1c7   :  { %1731 = vset.pattern.permute.xlu1 %v1916_v57  ;;  %v2345_v57 = vpop.permute.xlu0 %564  ;;  %v3068_v39 = vstv %s2386_s2 }
 0x1c8   :  { %883 = vperm.xlu1 %1731, %v2214_v23  }
 0x1cc   :  { %v569_v7 = vpop.permute.xlu2 %568 }
 0x1cd   :  { %v2336_v63 = vadd.f32 %v3016_v0, %v569_v7 }
 0x1ce   :  { %v711_v3 = vpop.permute.xlu1 %710 }
 0x1cf   :  { %3041 = vst [vmem:[#allocation20_spill] sm:$0xff] %v2336_v63  ;;  %v2341_v36 = vadd.f32 %v3015_v53, %v711_v3  ;;  %v2355_v3 = vpop.permute.xlu0 %748  ;;  %v3105_v63 = vstv %s2417_s22 }
 0x1d0   :  { %1735 = vset.pattern.permute.xlu1 %v1900_v32  ;;  %v3017_v32 = vperm.slane %v2253_v59, 5 }
 0x1d1   :  { %752 = vperm.xlu1 %1735, %v2038_v10  }
 0x1d5   :  { %v734_v23 = vpop.permute.xlu2 %733 }
 0x1d6   :  { %v2347_v15 = vadd.f32 %v736_v18, %v734_v23 }
 0x1d7   :  { %v493_v56 = vpop.permute.xlu1 %492 }
 0x1d8   :  { %v2351_v7 = vadd.f32 %v495_v21, %v493_v56 }
 0x1d9   :  { %1737 = vset.pattern.permute.xlu1 %v1902_v35  ;;  %v2378_v35 = vpop.permute.xlu0 %767 }
 0x1da   :  { %771 = vperm.xlu1 %1737, %v2038_v10   ;;  %v244_v10 = vand.u32 2147483647, %v241_v17  ;;  %v3051_v17 = vperm.slane %v2199_v16, 6  ;;  %v359_v16 = vand.u32 2147483647, %v2204_v19 }
 0x1db   :  { %v537_v19 = vand.u32 2147483647, %v2211_v22  ;;  %v3026_v22 = vperm.slane %v2223_v27, 4 }
 0x1dd   :  { %v756_v37 = vadd.f32 %v3026_v22, %v2355_v3  ;;  %v3075_v3 = vperm.slane %v2177_v4, 5 }
 0x1de   :  { %v2357_v53 = vpop.permute.xlu2 %439 }
 0x1e0   :  { %v990_v0 = vpop.permute.xlu1 %989 }
 0x1e1   :  { %v2366_v18 = vadd.f32 %v3017_v32, %v990_v0  ;;  %v572_v32 = vadd.f32 %v3051_v17, %v2345_v57  ;;  %v2493_v17 = vmul.f32 %v246_v5, %v245_v42 }
 0x1e3   :  { %3042 = vst [vmem:[#allocation21_spill] sm:$0xff] %v2366_v18 }
 0x1e7   :  { %v2382_v21 = vpop.permute.xlu2 %661 }
 0x1e8   :  { %3043 = vst [vmem:[#allocation22_spill] sm:$0xff] %v2382_v21 }
 0x1e9   :  { %v512_v56 = vpop.permute.xlu1 %511 }
 0x1ea   :  { %v2392_v0 = vadd.f32 %v514_v26, %v512_v56  ;;  %v584_v26 = vpop.permute.xlu0 %583 }
 0x1eb   :  { %v591_v20 = vadd.f32 %v590_v62, %v584_v26  ;;  %v3052_v26 = vperm.slane %v2223_v27, 0 }
 0x1f0   :  { %v2406_v23 = vpop.permute.xlu2 %1012 }
 0x1f1   :  { %3044 = vst [vmem:[#allocation23_spill] sm:$0xff] %v2406_v23  ;;  %v3053_v23 = vstv %s2360_s5 }
 0x1f2   :  { %v2410_v56 = vpop.permute.xlu1 %936  ;;  %v588_v34 = vpop.permute.xlu0 %587  ;;  %v2473_v21 = vmul.f32 %v3053_v23, %v358_v44  ;;  %v2489_v23 = vmul.f32 %v246_v5, %v244_v10  ;;  %v594_v44 = vand.u32 2147483647, %v591_v20  ;;  %v499_v20 = vand.u32 2147483647, %v2219_v24 }
 0x1f3   :  { %v2483_v57 = vadd.f32 %v590_v62, %v588_v34  ;;  %v480_v62 = vand.u32 2147483647, %v477_v14  ;;  %v575_v34 = vand.u32 2147483647, %v572_v32  ;;  %v3059_v5 = vstv %s2360_s5  ;;  %s2523_s5 = sld [smem:[#allocation2 + $0x4]] }
 0x1f4   :  { %v2506_v42 = vmul.f32 %v3059_v5, %v359_v16  ;;  %v3061_v32 = vstv %s2372_s27  ;;  %v2544_v8 = vmul.f32 %v3068_v39, %v499_v20  ;;  %v336_v39 = vadd.f32 %v3075_v3, %v2109_v40 }
 0x1f5   :  { %3055 = vst [vmem:[#allocation25_spill] sm:$0xff] %v2483_v57  ;;  %v2513_v14 = vmul.f32 %v3061_v32, %v594_v44  ;;  %v2531_v44 = vmul.f32 %v3066_v11, %v480_v62  ;;  %v3067_v32 = vstv %s2384_s29  ;;  %v299_v62 = vadd.f32 %v297_v31, %v2173_v2 }
 0x1f6   :  { %3060 = vst [vmem:[#allocation27_spill] sm:$0xff] %v2506_v42  ;;  %v3073_v2 = vstv %s2388_s30  ;;  %v3077_v40 = vmov %v3075_v3  ;;  %v339_v22 = vand.u32 2147483647, %v336_v39  ;;  %v3079_v10 = vstv %s2400_s17 }
 0x1f7   :  { %3062 = vst [vmem:[#allocation28_spill] sm:$0xff] %v2513_v14  ;;  %v2571_v31 = vmul.f32 %v3073_v2, %v518_v48  ;;  %v556_v48 = vand.u32 2147483647, %v2259_v33  ;;  %v759_v2 = vand.u32 2147483647, %v756_v37  ;;  %v3091_v3 = vstv %s2362_s24  ;;  %v3106_v14 = vld [vmem:[#allocation22_spill] sm:$0xff] }
 0x1f8   :  { %v925_v39 = vand.u32 2147483647, %v2280_v61 }
 0x1f9   :  { %v2451_v58 = vpop.permute.xlu2 %1031 }
 0x1fa   :  { %3048 = vst [vmem:[#allocation24_spill] sm:$0xff] %v2451_v58  ;;  %v263_v58 = vand.u32 2147483647, %v260_v50 }
 0x1fb   :  { %v677_v25 = vpop.permute.xlu1 %676 }
 0x1fc   :  { %v2469_v45 = vadd.f32 %v3052_v26, %v677_v25  ;;  %v3056_v25 = vstv %s2362_s24  ;;  %v3058_v26 = vstv %s2370_s26  ;;  %s2586_s26 = sld [smem:[#allocation2 + $0x12]] }
 0x1fd   :  { %v2487_v50 = vmul.f32 %v3056_v25, %v377_v49  ;;  %v2499_v49 = vmul.f32 %v3058_v26, %v263_v58  ;;  %v3025_v58 = vperm.slane %v2223_v27, 5  ;;  %v3063_v25 = vstv %s2374_s12  ;;  %s2945_s24 = sld [smem:[#allocation5]] }
 0x1fe   :  { %v2517_v24 = vmul.f32 %v3063_v25, %v461_v6  ;;  %v3065_v26 = vstv %s2376_s28  ;;  %v2535_v6 = vmul.f32 %v3067_v32, %v575_v34  ;;  %v683_v34 = vand.u32 2147483647, %v2243_v51 }
 0x1ff   :  { %3057 = vst [vmem:[#allocation26_spill] sm:$0xff] %v2487_v50  ;;  %v2527_v5 = vmul.f32 %v3065_v26, %v537_v19  ;;  %v2548_v19 = vmul.f32 %v3069_v46, %v264_v60  ;;  %v3070_v26 = vstv %s2394_s0  ;;  %v775_v20 = vadd.f32 %v3025_v58, %v2378_v35  ;;  %s1921_s0 = smov 16  }
 0x200   :  { %v2552_v18 = vmul.f32 %v3070_v26, %v282_v9  ;;  %v3071_v46 = vperm.slane %v2177_v4, 4  ;;  %v3072_v9 = vstv %s2374_s12  ;;  %v3074_v51 = vmov %v3070_v26  ;;  %s2949_s12 = sld [smem:[#allocation5 + $0x2]] }
 0x201   :  { %v2567_v11 = vmul.f32 %v3072_v9, %v462_v12  ;;  %v2575_v32 = vmul.f32 %v3074_v51, %v283_v43  ;;  %v702_v26 = vand.u32 2147483647, %v2249_v52  ;;  %v301_v35 = vand.u32 2147483647, %v298_v30 }
 0x202   :  { %v2521_v16 = vpop.permute.xlu2 %809  ;;  %v317_v60 = vadd.f32 %v3071_v46, %v2112_v41  ;;  %v3076_v41 = vmov %v3071_v46  ;;  %v302_v43 = vand.u32 2147483647, %v299_v62  ;;  %v337_v52 = vadd.f32 %v3077_v40, %v2232_v38 }
 0x203   :  { %3064 = vst [vmem:[#allocation29_spill] sm:$0xff] %v2521_v16  ;;  %v318_v12 = vadd.f32 %v3076_v41, %v2196_v13  ;;  %v3078_v30 = vstv %s2398_s16  ;;  %v778_v51 = vand.u32 2147483647, %v775_v20  ;;  %v322_v41 = vstv %s2523_s5  ;;  %s1925_s5 = smov 124  }
 0x204   :  { %v2537_v25 = vpop.permute.xlu1 %955  ;;  %v2594_v9 = vmul.f32 %v3078_v30, %v683_v34  ;;  %v320_v13 = vand.u32 2147483647, %v317_v60  ;;  %v2603_v4 = vmul.f32 %v3079_v10, %v702_v26  ;;  %v3080_v38 = vstv %s2396_s3  ;;  %s1922_s3 = smov 8  }
 0x205   :  { %v2607_v40 = vmul.f32 %v3080_v38, %v301_v35  ;;  %v341_v34 = vstv %s2540_s15  ;;  %v321_v37 = vand.u32 2147483647, %v318_v12  ;;  %v3081_v20 = vstv %s2402_s18  ;;  %s2635_s15 = sld [smem:[#allocation2 + $0x16]] }
 0x206   :  { %v2612_v60 = vmul.f32 %v3081_v20, %v556_v48  ;;  %v3082_v33 = vmov %v3080_v38  ;;  %v340_v58 = vand.u32 2147483647, %v337_v52  ;;  %v3083_v10 = vstv %s2480_s25  ;;  %v222_v52 = vpop.permute.xlu0 %221 }
 0x207   :  { %v2616_v46 = vmul.f32 %v3082_v33, %v302_v43  ;;  %v2622_v26 = vmul.f32 %v3083_v10, %v759_v2  ;;  %v3084_v35 = vstv %s2491_s14  ;;  %v2628_v12 = vmul.f32 %v322_v41, %v320_v13 }
 0x208   :  { %v2626_v38 = vmul.f32 %v3084_v35, %v778_v51  ;;  %v740_v48 = vand.u32 2147483647, %v2287_v54  ;;  %v538_v20 = vand.u32 2147483647, %v2302_v55  ;;  %v3085_v43 = vperm.slane %v2253_v59, 2 }
 0x209   :  { %v2637_v61 = vmul.f32 %v341_v34, %v339_v22  ;;  %v378_v2 = vand.u32 2147483647, %v2307_v29  ;;  %v481_v51 = vand.u32 2147483647, %v2320_v1  ;;  %v557_v55 = vand.u32 2147483647, %v2325_v47 }
 0x20a   :  { %v941_v33 = vadd.f32 %v3085_v43, %v2410_v56  ;;  %v2642_v54 = vmul.f32 %v322_v41, %v321_v37  ;;  %v906_v56 = vand.u32 2147483647, %v2330_v28  ;;  %v721_v10 = vand.u32 2147483647, %v2341_v36 }
 0x20b   :  { %v2598_v62 = vpop.permute.xlu2 %443  ;;  %v2647_v35 = vmul.f32 %v341_v34, %v340_v58  ;;  %v741_v29 = vand.u32 2147483647, %v2347_v15  ;;  %v500_v22 = vand.u32 2147483647, %v2351_v7  ;;  %v519_v1 = vand.u32 2147483647, %v2392_v0 }
 0x20c   :  { %v3086_v47 = vperm.slane %v2253_v59, 3  ;;  %v3087_v37 = vstv %s2404_s19  ;;  %v3088_v43 = vstv %s2448_s23  ;;  %v3089_v58 = vstv %s2376_s28  ;;  %s2758_s28 = sld [smem:[#allocation2 + $0x1e]] }
 0x20d   :  { %v696_v30 = vpop.permute.xlu1 %695  ;;  %v928_v28 = vmul.f32 %v3087_v37, %v925_v39  ;;  %v2659_v36 = vmul.f32 %v3088_v43, %v740_v48  ;;  %v2663_v34 = vmul.f32 %v3089_v58, %v538_v20  ;;  %v944_v15 = vand.u32 2147483647, %v941_v33 }
 0x20e   :  { %v960_v41 = vadd.f32 %v3086_v47, %v2537_v25  ;;  %v2667_v7 = vmul.f32 %v3091_v3, %v378_v2  ;;  %v3093_v0 = vstv %s2380_s13  ;;  %v3094_v16 = vstv %s2402_s18  ;;  %s2767_s13 = sld [smem:[#allocation2 + $0x1f]]  ;;  %s1928_s18 = smov [#allocation7]  }
 0x20f   :  { %3090 = vst [vmem:[#allocation30_spill] sm:$0xff] %v2663_v34  ;;  %v484_v13 = vmul.f32 %v3093_v0, %v481_v51  ;;  %v2673_v57 = vmul.f32 %v3094_v16, %v557_v55  ;;  %v684_v25 = vand.u32 2147483647, %v2469_v45  ;;  %v3096_v47 = vstv %s2408_s20  ;;  %v2686_v51 = vld [vmem:[%s2989_s1] sm:$0xff]   ;;  %s2745_s1 = sld [smem:[#allocation2 + $0x1d]] }
 0x210   :  { %3092 = vst [vmem:[#allocation31_spill] sm:$0xff] %v2667_v7  ;;  %v909_v37 = vmul.f32 %v3096_v47, %v906_v56  ;;  %v3097_v20 = vstv %s2586_s26  ;;  %v3098_v3 = vperm.slane %v2223_v27, 1  ;;  %v3100_v16 = vmov %v3088_v43 }
 0x211   :  { %3095 = vst [vmem:[#allocation32_spill] sm:$0xff] %v2673_v57  ;;  %v724_v33 = vmul.f32 %v3097_v20, %v721_v10  ;;  %v2690_v55 = vmul.f32 %v3100_v16, %v741_v29  ;;  %v3101_v45 = vstv %s2386_s2  ;;  %v3102_v56 = vstv %s2388_s30  ;;  %s1919_s2 = smov 112   ;;  %s1920_s30 = smov 24  }
 0x212   :  { %v700_v2 = vadd.f32 %v3098_v3, %v696_v30  ;;  %3099 = vst [vmem:[#allocation33_spill] sm:$0xff] %v2686_v51  ;;  %v503_v43 = vmul.f32 %v3101_v45, %v500_v22  ;;  %v2696_v58 = vmul.f32 %v3102_v56, %v519_v1  ;;  %v963_v0 = vand.u32 2147483647, %v960_v41 }
 0x213   :  { %v3103_v20 = vstv %s2413_s21  ;;  %v3104_v16 = vstv %s2398_s16  ;;  %v1614_v1 = vunpack.c.l.bf16 %v2686_v51  ;;  %s3160_s16 = sld [smem:[#allocation34_spill]] }
 0x214   :  { %v888_v39 = vpop.permute.xlu2 %887  ;;  %v947_v30 = vmul.f32 %v3103_v20, %v944_v15  ;;  %v687_v7 = vmul.f32 %v3104_v16, %v684_v25  ;;  %v703_v45 = vand.u32 2147483647, %v700_v2  ;;  %v966_v34 = vmul.f32 %v3105_v63, %v963_v0 }
 0x215   :  { %v3107_v2 = vperm.slane %v2253_v59, 4  ;;  %v1547_v63 = vadd.f32 -1.0, %v1614_v1 }
 0x216   :  { %v2698_v47 = vpop.f32.mrf.mxu2  ;;  %v975_v10 = vpop.permute.xlu1 %974 }
 0x217   :  { %v446_v3 = vperm.slane %v2698_v47, 1  ;;  %v229_v48 = vperm.slane %v2698_v47, 0  ;;  %v227_v57 = vpop.permute.xlu0 %226  ;;  %v668_v29 = vperm.slane %v2698_v47, 2  ;;  %v890_v41 = vperm.slane %v2698_v47, 3  ;;  %v3144_v47 = vld [vmem:[#allocation21_spill] sm:$0xff] }
 0x218   :  { %v979_v51 = vadd.f32 %v3107_v2, %v975_v10  ;;  %v3113_v2 = vld [vmem:[#allocation23_spill] sm:$0xff] }
 0x219   :  { %v447_v56 = vadd.f32 %v446_v3, %v2357_v53  ;;  %v448_v15 = vadd.f32 %v446_v3, %v2598_v62  ;;  %v230_v20 = vadd.f32 %v229_v48, %v222_v52  ;;  %v231_v50 = vadd.f32 %v229_v48, %v227_v57 }
 0x21a   :  { %v669_v42 = vadd.f32 %v668_v29, %v3106_v14  ;;  %v892_v25 = vadd.f32 %v890_v41, %v888_v39  ;;  %v3108_v48 = vstv %s2400_s17  ;;  %s1529_s17 = sshll.u32 %s3160_s16, 4  ;;  %s1530_s17 = int_to_ptr.hbm [resolvable:$true] %s1529_s17 }
 0x21b   :  { %v466_v16 = vadd.f32 %v2517_v24, %v447_v56  ;;  %v467_v22 = vadd.f32 %v2567_v11, %v448_v15  ;;  %v249_v53 = vadd.f32 %v2489_v23, %v230_v20  ;;  %v250_v62 = vadd.f32 %v2493_v17, %v231_v50 }
 0x21c   :  { %v688_v52 = vadd.f32 %v2594_v9, %v669_v42  ;;  %v911_v57 = vadd.f32 %v909_v37, %v892_v25  ;;  %v706_v14 = vmul.f32 %v3108_v48, %v703_v45  ;;  %v982_v42 = vand.u32 2147483647, %v979_v51 }
 0x21d   :  { %v485_v0 = vadd.f32 %v2531_v44, %v466_v16  ;;  %v486_v39 = vadd.f32 %v484_v13, %v467_v22  ;;  %v268_v24 = vadd.f32 %v2499_v49, %v249_v53  ;;  %v666_v3 = vpop.permute.xlu2 %665  ;;  %v269_v11 = vadd.f32 %v2548_v19, %v250_v62 }
 0x21e   :  { %v707_v10 = vadd.f32 %v2603_v4, %v688_v52  ;;  %v670_v56 = vadd.f32 %v668_v29, %v666_v3  ;;  %v930_v23 = vadd.f32 %v928_v28, %v911_v57  ;;  %v3109_v19 = vperm.slane %v2223_v27, 2 }
 0x21f   :  { %v504_v50 = vadd.f32 %v2544_v8, %v485_v0  ;;  %v505_v17 = vadd.f32 %v503_v43, %v486_v39  ;;  %v287_v9 = vadd.f32 %v2552_v18, %v268_v24  ;;  %v715_v37 = vpop.permute.xlu1 %714  ;;  %v787_v1 = vpop.permute.xlu0 %786  ;;  %v288_v44 = vadd.f32 %v2575_v32, %v269_v11 }
 0x220   :  { %v726_v13 = vadd.f32 %v724_v33, %v707_v10  ;;  %v689_v49 = vadd.f32 %v687_v7, %v670_v56  ;;  %v719_v22 = vadd.f32 %v3109_v19, %v715_v37  ;;  %v3110_v4 = vperm.slane %v2223_v27, 6  ;;  %v3120_v10 = vld [vmem:[#allocation28_spill] sm:$0xff]  ;;  %v3121_v56 = vld [vmem:[#allocation26_spill] sm:$0xff] }
 0x221   :  { %v523_v8 = vadd.f32 %v2571_v31, %v504_v50  ;;  %v306_v51 = vadd.f32 %v2607_v40, %v287_v9  ;;  %v949_v43 = vadd.f32 %v947_v30, %v930_v23  ;;  %v307_v18 = vadd.f32 %v2616_v46, %v288_v44  ;;  %v3122_v50 = vld [vmem:[#allocation30_spill] sm:$0xff] }
 0x222   :  { %v794_v28 = vadd.f32 %v3110_v4, %v787_v1  ;;  %v708_v29 = vadd.f32 %v706_v14, %v689_v49  ;;  %v722_v45 = vand.u32 2147483647, %v719_v22  ;;  %v745_v32 = vadd.f32 %v2659_v36, %v726_v13  ;;  %v3127_v4 = vld [vmem:[#allocation32_spill] sm:$0xff] }
 0x223   :  { %v3111_v33 = vstv %s2427_s4  ;;  %v542_v20 = vadd.f32 %v2527_v5, %v523_v8  ;;  %v325_v25 = vadd.f32 %v2628_v12, %v306_v51  ;;  %v3112_v31 = vstv %s2586_s26  ;;  %v3128_v8 = vld [vmem:[#allocation25_spill] sm:$0xff] }
 0x224   :  { %v985_v7 = vmul.f32 %v3111_v33, %v982_v42  ;;  %v797_v15 = vand.u32 2147483647, %v794_v28  ;;  %v725_v16 = vmul.f32 %v3112_v31, %v722_v45  ;;  %v764_v40 = vadd.f32 %v2622_v26, %v745_v32  ;;  %v3123_v42 = vld [vmem:[#allocation20_spill] sm:$0xff] }
 0x225   :  { %v326_v30 = vadd.f32 %v2642_v54, %v307_v18  ;;  %v968_v46 = vadd.f32 %v966_v34, %v949_v43  ;;  %v3114_v53 = vperm.slane %v2253_v59, 6  ;;  %v3115_v62 = vstv %s2635_s15 }
 0x226   :  { %v800_v52 = vmul.f32 %v3115_v62, %v797_v15  ;;  %v561_v57 = vadd.f32 %v2612_v60, %v542_v20  ;;  %v344_v5 = vadd.f32 %v2637_v61, %v325_v25  ;;  %v727_v12 = vadd.f32 %v725_v16, %v708_v29  ;;  %v3116_v60 = vld [vmem:[#allocation24_spill] sm:$0xff]  ;;  %v3131_v62 = vld [vmem:[#allocation15_spill] sm:$0xff] }
 0x227   :  { %v1017_v36 = vadd.f32 %v3114_v53, %v3113_v2  ;;  %v783_v48 = vadd.f32 %v2626_v38, %v764_v40  ;;  %v345_v26 = vadd.f32 %v2647_v35, %v326_v30  ;;  %v987_v54 = vadd.f32 %v985_v7, %v968_v46 }
 0x228   :  { %v2762_v34 = vmul.f32 1e+30, %v1547_v63  ;;  %v580_v14 = vadd.f32 %v2535_v6, %v561_v57  ;;  %v363_v0 = vadd.f32 %v2473_v21, %v344_v5  ;;  %v524_v39 = vadd.f32 %v2696_v58, %v505_v17  ;;  %v994_v38 = vpop.permute.xlu1 %993  ;;  %v3118_v63 = vld [vmem:[#allocation27_spill] sm:$0xff] }
 0x229   :  { %v3117_v61 = vperm.slane %v2253_v59, 7  ;;  %v802_v3 = vadd.f32 %v800_v52, %v783_v48  ;;  %v2773_v35 = vadd.f32 %v2690_v55, %v727_v12  ;;  %v364_v11 = vadd.f32 %v3118_v63, %v345_v26  ;;  %v3126_v55 = vld [vmem:[#allocation31_spill] sm:$0xff]  ;;  %v3133_v48 = vld [vmem:[#allocation33_spill] sm:$0xff] }
 0x22a   :  { %v3119_v6 = vperm.slane %v2253_v59, 5  ;;  %v599_v58 = vadd.f32 %v3120_v10, %v580_v14  ;;  %v382_v23 = vadd.f32 %v3121_v56, %v363_v0  ;;  %v543_v17 = vadd.f32 %v3122_v50, %v524_v39  ;;  %v3134_v14 = vld [vmem:[#allocation13_spill] sm:$0xff]  ;;  %v3138_v10 = vld [vmem:[#allocation16_spill] sm:$0xff] }
 0x22b   :  { %v1036_v24 = vadd.f32 %v3117_v61, %v3116_v60  ;;  %v3124_v9 = vand.u32 2147483647, %v3123_v42  ;;  %v3125_v37 = vstv %s2384_s29  ;;  %v1020_v44 = vand.u32 2147483647, %v1017_v36  ;;  %s2798_s29 = sld [smem:[#allocation2 + $0x17]] }
 0x22c   :  { %v998_v21 = vadd.f32 %v3119_v6, %v994_v38  ;;  %v383_v13 = vadd.f32 %v3126_v55, %v364_v11  ;;  %v2787_v19 = vadd.f32 %v599_v58, %v2762_v34  ;;  %v2790_v22 = vadd.f32 %v382_v23, %v2762_v34 }
 0x22d   :  { %v579_v1 = vmul.f32 %v3125_v37, %v3124_v9  ;;  %v562_v28 = vadd.f32 %v3127_v4, %v543_v17  ;;  %v3129_v51 = vand.u32 2147483647, %v3128_v8  ;;  %v3130_v43 = vstv %s2372_s27  ;;  %v3143_v8 = vld [vmem:[#allocation17_spill] sm:$0xff]  ;;  %s1918_s27 = smov 120  }
 0x22e   :  { %v1001_v49 = vand.u32 2147483647, %v998_v21  ;;  %v1002_v29 = vstv %s2745_s1  ;;  %v1039_v45 = vand.u32 2147483647, %v1036_v24  ;;  %v603_v33 = vsel %vm386_vm3, %v2787_v19, -inf  ;;  %v3136_v24 = vld [vmem:[#allocation14_spill] sm:$0xff] }
 0x22f   :  { %v598_v18 = vmul.f32 %v3130_v43, %v3129_v51  ;;  %v387_v7 = vsel %vm386_vm3, %v2790_v22, -inf  ;;  %v581_v15 = vadd.f32 %v579_v1, %v562_v28  ;;  %v1021_v20 = vstv %s2758_s28  ;;  %604 = vmax.xlane.f32.xlu0 %v603_v33  ;;  %s2951_s1 = sld [smem:[#allocation5 + $0x3]] }
 0x230   :  { %v1004_v32 = vmul.f32 %v1002_v29, %v1001_v49  ;;  %388 = vmax.xlane.f32.xlu1 %v387_v7  ;;  %v1023_v25 = vmul.f32 %v1021_v20, %v1020_v44  ;;  %v1040_v40 = vstv %s2767_s13  ;;  %v812_v30 = vperm.slane %v2223_v27, 7  ;;  %v3146_v7 = vld [vmem:[#allocation18_spill] sm:$0xff] }
 0x231   :  { %v2805_v16 = vadd.f32 %v598_v18, %v581_v15  ;;  %v1042_v46 = vmul.f32 %v1040_v40, %v1039_v45  ;;  %v806_v2 = vpop.permute.xlu1 %805  ;;  %v3132_v52 = vperm.slane %v2253_v59, 0  ;;  %v1615_v26 = vunpack.c.h.bf16 %v3133_v48 }
 0x232   :  { %v1006_v31 = vadd.f32 %v1004_v32, %v987_v54  ;;  %v813_v36 = vadd.f32 %v812_v30, %v806_v2  ;;  %v3135_v54 = vperm.slane %v2253_v59, 1  ;;  %v818_v39 = vstv %s2798_s29 }
 0x233   :  { %v902_v57 = vadd.f32 %v3132_v52, %v3131_v62  ;;  %v3137_v38 = vperm.slane %v2253_v59, 2  ;;  %v1548_v6 = vadd.f32 -1.0, %v1615_v26  ;;  %v3139_v58 = vperm.slane %v2253_v59, 3 }
 0x234   :  { %v1025_v53 = vadd.f32 %v1023_v25, %v1006_v31  ;;  %v816_v12 = vand.u32 2147483647, %v813_v36  ;;  %v921_v0 = vadd.f32 %v3135_v54, %v3134_v14  ;;  %v3140_v42 = vstv %s2408_s20  ;;  %v791_v54 = vpop.permute.xlu0 %790  ;;  %s1929_s20 = smov 128  }
 0x235   :  { %v905_v61 = vand.u32 2147483647, %v902_v57  ;;  %v940_v63 = vadd.f32 %v3137_v38, %v3136_v24  ;;  %v959_v56 = vadd.f32 %v3139_v58, %v3138_v10  ;;  %v2832_v1 = vmul.f32 1e+30, %v1548_v6  ;;  %v3152_v10 = vld [vmem:[#allocation29_spill] sm:$0xff] }
 0x236   :  { %v1044_v5 = vadd.f32 %v1042_v46, %v1025_v53  ;;  %v819_v60 = vmul.f32 %v818_v39, %v816_v12  ;;  %v924_v21 = vand.u32 2147483647, %v921_v0  ;;  %v3141_v44 = vstv %s2404_s19  ;;  %s1527_s19 = sshll.u32 %s1928_s18, 4  ;;  %s1528_s19 = int_to_ptr.vmem [resolvable:$true] %s1527_s19 }
 0x237   :  { %v943_v17 = vand.u32 2147483647, %v940_v63  ;;  %v908_v9 = vmul.f32 %v3140_v42, %v905_v61  ;;  %v962_v55 = vand.u32 2147483647, %v959_v56  ;;  %v3142_v4 = vstv %s2413_s21 }
 0x238   :  { %v821_v11 = vadd.f32 %v819_v60, %v802_v3  ;;  %v927_v59 = vmul.f32 %v3141_v44, %v924_v21  ;;  %v981_v51 = vand.u32 2147483647, %v3143_v8  ;;  %v2840_v18 = vadd.f32 %v383_v13, %v2832_v1  ;;  %v3149_v13 = vld [vmem:[#allocation19_spill] sm:$0xff] }
 0x239   :  { %v946_v28 = vmul.f32 %v3142_v4, %v943_v17  ;;  %v3145_v45 = vstv %s2417_s22  ;;  %v1019_v15 = vand.u32 2147483647, %v3146_v7  ;;  %v3147_v25 = vstv %s2427_s4 }
 0x23a   :  { %v884_v23 = vpop.permute.xlu1 %883  ;;  %v2824_v50 = vadd.f32 %v821_v11, %v2762_v34  ;;  %v965_v32 = vmul.f32 %v3145_v45, %v962_v55  ;;  %v984_v31 = vmul.f32 %v3147_v25, %v981_v51  ;;  %v3148_v53 = vperm.slane %v2223_v27, 4 }
 0x23b   :  { %v891_v37 = vadd.f32 %v890_v41, %v884_v23  ;;  %v1000_v41 = vand.u32 2147483647, %v3144_v47  ;;  %v390_v62 = vsel %vm386_vm3, %v2840_v18, -inf  ;;  %v1038_v52 = vand.u32 2147483647, %v3149_v13 }
 0x23c   :  { %v825_v3 = vsel %vm386_vm3, %v2824_v50, -inf  ;;  %v1022_v26 = vmul.f32 %v1021_v20, %v1019_v15  ;;  %v3150_v0 = vstv %s2480_s25  ;;  %v2856_v61 = vadd.f32 %v1044_v5, %v2832_v1 }
 0x23d   :  { %v910_v49 = vadd.f32 %v908_v9, %v891_v37  ;;  %826 = vmax.xlane.f32.xlu2 %v825_v3  ;;  %v1003_v57 = vmul.f32 %v1002_v29, %v1000_v41  ;;  %v1041_v24 = vmul.f32 %v1040_v40, %v1038_v52  ;;  %v3151_v11 = vperm.slane %v2223_v27, 6 }
 0x23e   :  { %v1050_v20 = vsel %vm386_vm3, %v2856_v61, -inf  ;;  %v814_v58 = vadd.f32 %v812_v30, %v3152_v10  ;;  %v3153_v56 = vperm.slane %v2223_v27, 5  ;;  %v3154_v9 = vstv %s2491_s14  ;;  %s1917_s14 = smov 104  }
 0x23f   :  { %v929_v43 = vadd.f32 %v927_v59, %v910_v49  ;;  %v795_v29 = vadd.f32 %v3151_v11, %v791_v54  ;;  %v3155_v3 = vstv %s2635_s15  ;;  %v602_v30 = vadd.f32 %v2805_v16, %v2832_v1 }
 0x240   :  { %v817_v42 = vand.u32 2147483647, %v814_v58 }
 0x241   :  { %v948_v33 = vadd.f32 %v946_v28, %v929_v43  ;;  %v798_v23 = vand.u32 2147483647, %v795_v29  ;;  %v606_v49 = vsel %vm386_vm3, %v602_v30, -inf }
 0x242   :  { %v820_v55 = vmul.f32 %v818_v39, %v817_v42 }
 0x243   :  { %v967_v46 = vadd.f32 %v965_v32, %v948_v33  ;;  %v753_v2 = vpop.permute.xlu1 %752  ;;  %v801_v44 = vmul.f32 %v3155_v3, %v798_v23 }
 0x244   :  { %v757_v36 = vadd.f32 %v3148_v53, %v753_v2 }
 0x245   :  { %391 = vmax.xlane.f32.xlu2 %v390_v62  ;;  %v986_v12 = vadd.f32 %v984_v31, %v967_v46 }
 0x246   :  { %v760_v48 = vand.u32 2147483647, %v757_v36 }
 0x247   :  { %v1005_v14 = vadd.f32 %v1003_v57, %v986_v12 }
 0x248   :  { %v763_v60 = vmul.f32 %v3150_v0, %v760_v48  ;;  %v3156_v0 = vld [vmem:[#allocation12_spill] sm:$0xff] }
 0x249   :  { %v1024_v38 = vadd.f32 %v1022_v26, %v1005_v14 }
 0x24a   :  { %v765_v63 = vadd.f32 %v763_v60, %v2773_v35  ;;  %v3157_v60 = vld [vmem:[#allocation11_spill] sm:$0xff] }
 0x24b   :  { %v1043_v6 = vadd.f32 %v1041_v24, %v1024_v38  ;;  %v1747_v24 = vpack.i.bf16 %v3157_v60, %v3156_v0 }
 0x24c   :  { %v772_v21 = vpop.permute.xlu1 %771 }
 0x24d   :  { %v776_v5 = vadd.f32 %v3153_v56, %v772_v21  ;;  %1051 = vmax.xlane.f32.xlu2 %v1050_v20  ;;  %v1045_v40 = vadd.f32 %v1043_v6, %v2762_v34 }
 0x24f   :  { %v779_v17 = vand.u32 2147483647, %v776_v5  ;;  %v1047_v35 = vsel %vm386_vm3, %v1045_v40, -inf }
 0x250   :  { %1048 = vmax.xlane.f32.xlu1 %v1047_v35 }
 0x251   :  { %v782_v37 = vmul.f32 %v3154_v9, %v779_v17 }
 0x253   :  { %v784_v59 = vadd.f32 %v782_v37, %v765_v63 }
 0x255   :  { %v803_v27 = vadd.f32 %v801_v44, %v784_v59 }
 0x257   :  { %v822_v4 = vadd.f32 %v820_v55, %v803_v27 }
 0x258   :  { %607 = vmax.xlane.f32.xlu1 %v606_v49 }
 0x259   :  { %v824_v28 = vadd.f32 %v822_v4, %v2832_v1 }
 0x25b   :  { %v828_v8 = vsel %vm386_vm3, %v824_v28, -inf }
 0x25c   :  { %829 = vmax.xlane.f32.xlu0 %v828_v8 }
 0x2a2   :  { %v605_v43 = vpop.xlane.xlu0 %604 }
 0x2a3   :  { %v389_v51 = vpop.xlane.xlu1 %388  ;;  %v609_v41 = vsub.f32 %v2787_v19, %v605_v43 }
 0x2a4   :  { %v393_v47 = vsub.f32 %v2790_v22, %v389_v51 }
 0x2a5   :  { %v611_v32 = vmul.f32 1.442695, %v609_v41 }
 0x2a6   :  { %v395_v45 = vmul.f32 1.442695, %v393_v47 }
 0x2a8   :  { %1772 = vpow2.f32 %v395_v45 }
 0x2a9   :  { %1774 = vpow2.f32 %v611_v32 }
 0x2ae   :  { %v1773_v16 = vpop.eup %1772 }
 0x2af   :  { %v2879_v39 = vpop.eup %1774  ;;  %v399_v33 = vsel %vm386_vm3, %v1773_v16, 0.0 }
 0x2b0   :  { %400 = vadd.xlane.f32.xlu1 %v399_v33  ;;  %v615_v7 = vsel %vm386_vm3, %v2879_v39, 0.0  ;;  %v827_v15 = vpop.xlane.xlu2 %826 }
 0x2b1   :  { %616 = vadd.xlane.f32.xlu0 %v615_v7  ;;  %v831_v25 = vsub.f32 %v2824_v50, %v827_v15 }
 0x2b3   :  { %v833_v22 = vmul.f32 1.442695, %v831_v25 }
 0x2b5   :  { %1776 = vpow2.f32 %v833_v22 }
 0x2b8   :  { %v392_v19 = vpop.xlane.xlu2 %391 }
 0x2b9   :  { %v394_v31 = vsub.f32 %v2840_v18, %v392_v19 }
 0x2bb   :  { %v2886_v46 = vpop.eup %1776  ;;  %v397_v2 = vmul.f32 1.442695, %v394_v31 }
 0x2bc   :  { %v837_v53 = vsel %vm386_vm3, %v2886_v46, 0.0 }
 0x2bd   :  { %1778 = vpow2.f32 %v397_v2  ;;  %838 = vadd.xlane.f32.xlu0 %v837_v53 }
 0x2c0   :  { %v1052_v57 = vpop.xlane.xlu2 %1051 }
 0x2c1   :  { %v1054_v26 = vsub.f32 %v2856_v61, %v1052_v57  ;;  %v1143_v57 = vld [vmem:[%s2995_s7 + $0x10] sm:$0xff] }
 0x2c3   :  { %v1779_v36 = vpop.eup %1778  ;;  %v1049_v62 = vpop.xlane.xlu1 %1048  ;;  %v1057_v38 = vmul.f32 1.442695, %v1054_v26  ;;  %v1769_v26 = vld [vmem:[%s2994_s6] ss:$0 sm:$0xff] }
 0x2c4   :  { %v1053_v13 = vsub.f32 %v1045_v40, %v1049_v62  ;;  %v402_v52 = vsel %vm386_vm3, %v1779_v36, 0.0 }
 0x2c5   :  { %403 = vadd.xlane.f32.xlu2 %v402_v52 }
 0x2c6   :  { %v1055_v50 = vmul.f32 1.442695, %v1053_v13 }
 0x2c8   :  { %1780 = vpow2.f32 %v1055_v50  ;;  %v1144_v50 = vld [vmem:[%s2995_s7 + $0x18] sm:$0xff] }
 0x2c9   :  { %1170 = vmatpush.msrb.mxu1 %v1144_v50 }
 0x2cb   :  { %v608_v12 = vpop.xlane.xlu1 %607  ;;  %1171 = vmatpush.msrb.mxu1 %v1143_v57 }
 0x2cc   :  { %v610_v48 = vsub.f32 %v602_v30, %v608_v12  ;;  %v1142_v12 = vld [vmem:[%s2995_s7 + $0x8] sm:$0xff] }
 0x2cd   :  { %1172 = vmatpush.msrb.mxu1 %v1142_v12  ;;  %v1359_v12 = vstv %s2951_s1 }
 0x2ce   :  { %v1781_v18 = vpop.eup %1780  ;;  %v613_v14 = vmul.f32 1.442695, %v610_v48  ;;  %v1141_v48 = vld [vmem:[%s2995_s7] sm:$0xff] }
 0x2cf   :  { %v1059_v54 = vsel %vm386_vm3, %v1781_v18, 0.0  ;;  %v830_v6 = vpop.xlane.xlu0 %829  ;;  %1173 = vmatpush.msrb.mxu1 %v1141_v48 }
 0x2d0   :  { %1782 = vpow2.f32 %v613_v14  ;;  %1060 = vadd.xlane.f32.xlu1 %v1059_v54  ;;  %v832_v21 = vsub.f32 %v824_v28, %v830_v6 }
 0x2d1   :  { %1748 = vrot.lane.b32.xlu0 %v1747_v24, %s1917_s14  ;;  %1784 = vpow2.f32 %v1057_v38  ;;  %s3159_s14 = sld [smem:[#allocation35_spill]] }
 0x2d2   :  { %v835_v20 = vmul.f32 1.442695, %v832_v21 }
 0x2d4   :  { %1786 = vpow2.f32 %v835_v20 }
 0x2d6   :  { %v1783_v63 = vpop.eup %1782 }
 0x2d7   :  { %v618_v11 = vsel %vm386_vm3, %v1783_v63, 0.0  ;;  %v1785_v29 = vpop.eup %1784 }
 0x2d8   :  { %619 = vadd.xlane.f32.xlu1 %v618_v11  ;;  %v1062_v61 = vsel %vm386_vm3, %v1785_v29, 0.0 }
 0x2da   :  { %v1787_v10 = vpop.eup %1786 }
 0x2db   :  { %v840_v58 = vsel %vm386_vm3, %v1787_v10, 0.0 }
 0x2dd   :  { %1743 = vrot.lane.b32.xlu2 %v1747_v24, %s1918_s27 }
 0x2e0   :  { %1063 = vadd.xlane.f32.xlu1 %v1062_v61 }
 0x2f9   :  { %1753 = vrot.lane.b32.xlu1 %v1747_v24, %s1919_s2 }
 0x306   :  { %841 = vadd.xlane.f32.xlu2 %v840_v58  ;;  %v1924_v58 = vmov 5  }
 0x307   :  { %1758 = vset.pattern.permute.xlu0 %v1924_v58 }
 0x323   :  { %v401_v56 = vpop.xlane.xlu1 %400 }
 0x324   :  { %1788 = vrcp.f32 %v401_v56  ;;  %v617_v23 = vpop.xlane.xlu0 %616  ;;  %v1770_v56 = vld [vmem:[%s2996_s8] ss:$0 sm:$0xff] }
 0x32a   :  { %v1789_v5 = vpop.eup %1788 }
 0x32b   :  { %v407_v40 = vmul.f32 %v1789_v5, %v1773_v16 }
 0x32d   :  { %1562 = vmatmul.msk.f32.vlgmr.msra.gmra.mxu3 %vm386_vm3, %v407_v40 }
 0x330   :  { %v839_v35 = vpop.xlane.xlu0 %838 }
 0x338   :  { %v404_v17 = vpop.xlane.xlu2 %403 }
 0x339   :  { %1790 = vrcp.f32 %v404_v17 }
 0x33a   :  { %1792 = vrcp.f32 %v617_v23  ;;  %v1146_v23 = vld [vmem:[%s2997_s9] sm:$0xf] }
 0x33f   :  { %v1791_v42 = vpop.eup %1790 }
 0x340   :  { %v1744_v9 = vpop.permute.xlu2 %1743  ;;  %v408_v37 = vmul.f32 %v1791_v42, %v1779_v36  ;;  %v1793_v3 = vpop.eup %1792  ;;  %v1926_v42 = vmov 6  }
 0x341   :  { %v1745_v44 = vunpack.i.l.bf16 %v1744_v9  ;;  %v1746_v55 = vunpack.i.h.bf16 %v1744_v9  ;;  %v623_v27 = vmul.f32 %v1793_v3, %v2879_v39  ;;  %v1927_v9 = vmov 7  }
 0x342   :  { %1563 = vmatmul.msk.f32.gmra.mxu3 %vm386_vm3, %v408_v37  ;;  %v3158_v37 = vmov 0  }
 0x343   :  { %v1061_v59 = vpop.xlane.xlu1 %1060  ;;  %651 = vmatpush.msrb.mxu2 %v1745_v44  ;;  %v1749_v30 = vpop.permute.xlu0 %1748 }
 0x344   :  { %1794 = vrcp.f32 %v1061_v59  ;;  %v1750_v49 = vunpack.i.l.bf16 %v1749_v30  ;;  %v1751_v4 = vunpack.i.h.bf16 %v1749_v30  ;;  %v1147_v30 = vld [vmem:[%s2998_s10] sm:$0x1]  ;;  %s2947_s10 = sld [smem:[#allocation5 + $0x1]] }
 0x345   :  { %652 = vmatpush.msrb.mxu2 %v1746_v55 }
 0x346   :  { %1572 = vmatmul.msk.f32.vlgmr.msrb.gmra.mxu2 %vm386_vm3, %v623_v27  ;;  %1095 = vmatpush.msrb.mxu3 %v1750_v49 }
 0x347   :  { %1596 = vmatpush.msk.msra.mxu2 %vm103_vm0, %v1146_v23 }
 0x348   :  { %1096 = vmatpush.msrb.mxu3 %v1751_v4 }
 0x34a   :  { %v1795_v28 = vpop.eup %1794 }
 0x34b   :  { %v620_v8 = vpop.xlane.xlu1 %619  ;;  %v1067_v51 = vmul.f32 %v1795_v28, %v1781_v18 }
 0x34c   :  { %1796 = vrcp.f32 %v620_v8 }
 0x34d   :  { %1592 = vmatmul.msk.f32.vlgmr.msrb.gmra.mxu3 %vm386_vm3, %v1067_v51 }
 0x352   :  { %v1797_v43 = vpop.eup %1796 }
 0x353   :  { %v1064_v47 = vpop.xlane.xlu1 %1063  ;;  %v624_v41 = vmul.f32 %v1797_v43, %v1783_v63 }
 0x354   :  { %1798 = vrcp.f32 %v1064_v47 }
 0x355   :  { %1573 = vmatmul.msk.f32.gmra.mxu2 %vm386_vm3, %v624_v41  ;;  %1800 = vrcp.f32 %v839_v35 }
 0x35a   :  { %v1799_v45 = vpop.eup %1798 }
 0x35b   :  { %v1068_v32 = vmul.f32 %v1799_v45, %v1785_v29  ;;  %v1801_v39 = vpop.eup %1800 }
 0x35c   :  { %v845_v15 = vmul.f32 %v1801_v39, %v2886_v46 }
 0x35d   :  { %1593 = vmatmul.msk.f32.gmra.mxu3 %vm386_vm3, %v1068_v32 }
 0x36b   :  { %v1754_v16 = vpop.permute.xlu1 %1753 }
 0x36c   :  { %v1755_v33 = vunpack.i.l.bf16 %v1754_v16  ;;  %v1756_v7 = vunpack.i.h.bf16 %v1754_v16 }
 0x36e   :  { %873 = vmatpush.msra.mxu0 %v1755_v33 }
 0x370   :  { %874 = vmatpush.msra.mxu0 %v1756_v7 }
 0x371   :  { %1582 = vmatmul.msk.f32.vlgmr.msra.gmra.mxu0 %vm386_vm3, %v845_v15 }
 0x379   :  { %v842_v25 = vpop.xlane.xlu2 %841 }
 0x37a   :  { %1802 = vrcp.f32 %v842_v25 }
 0x380   :  { %v1803_v22 = vpop.eup %1802 }
 0x381   :  { %v846_v19 = vmul.f32 %v1803_v22, %v1787_v10  ;;  %v1923_v10 = vmov 4   ;;  %v1302_v22 = vstv %s2945_s24 }
 0x382   :  { %1757 = vset.pattern.permute.xlu1 %v1923_v10 }
 0x383   :  { %1583 = vmatmul.msk.f32.gmra.mxu0 %vm386_vm3, %v846_v19 }
 0x3b0   :  { %v432_v31 = vpop.f32.mrf.mxu3 }
 0x3c5   :  { %v435_v2 = vpop.f32.mrf.mxu3 }
 0x3c9   :  { %v654_v62 = vpop.f32.mrf.mxu2 }
 0x3d0   :  { %v1098_v53 = vpop.f32.mrf.mxu3 }
 0x3d1   :  { %1122 = vrot.lane.b32.xlu1 %v1098_v53, %s1920_s30 }
 0x3d8   :  { %v657_v46 = vpop.f32.mrf.mxu2 }
 0x3e0   :  { %v1101_v52 = vpop.f32.mrf.mxu3 }
 0x3ee   :  { %v876_v36 = vpop.f32.mrf.mxu0 }
 0x3ef   :  { %1114 = vrot.lane.b32.xlu0 %v876_v36, %s1921_s0 }
 0x3f7   :  { %1106 = vrot.lane.b32.xlu0 %v654_v62, %s1922_s3 }
 0x3ff   :  { %1108 = vrot.lane.b32.xlu0 %v657_v46, %s1922_s3 }
 0x400   :  { %v879_v13 = vpop.f32.mrf.mxu0 }
 0x401   :  { %1116 = vrot.lane.b32.xlu1 %v879_v13, %s1921_s0  ;;  %v1340_v13 = vstv %s2949_s12 }
 0x407   :  { %1124 = vrot.lane.b32.xlu0 %v1101_v52, %s1920_s30 }
 0x443   :  { %v1123_v0 = vpop.permute.xlu1 %1122 }
 0x461   :  { %v1115_v18 = vpop.permute.xlu0 %1114 }
 0x469   :  { %v1107_v14 = vpop.permute.xlu0 %1106 }
 0x46a   :  { %v1129_v54 = vsel %vm1128_vm4, %v432_v31, %v1107_v14 }
 0x46b   :  { %v1131_v60 = vsel %vm386_vm3, %v1129_v54, %v1115_v18 }
 0x46c   :  { %v1134_v24 = vsel %vm1133_vm5, %v1131_v60, %v1123_v0 }
 0x46d   :  { %v1139_v38 = vadd.f32 %v1769_v26, %v1134_v24 }
 0x46f   :  { %1594 = vmatmul.msk.f32.vlgmr.msrb.gmra.mxu1 %vm168_vm2, %v1139_v38 }
 0x471   :  { %v1109_v63 = vpop.permute.xlu0 %1108 }
 0x472   :  { %v1130_v11 = vsel %vm1128_vm4, %v435_v2, %v1109_v63  ;;  %v1321_v2 = vstv %s2947_s10 }
 0x473   :  { %v1117_v29 = vpop.permute.xlu1 %1116 }
 0x474   :  { %v1132_v61 = vsel %vm386_vm3, %v1130_v11, %v1117_v29 }
 0x479   :  { %v1125_v6 = vpop.permute.xlu0 %1124 }
 0x47a   :  { %v1135_v21 = vsel %vm1133_vm5, %v1132_v61, %v1125_v6 }
 0x47b   :  { %v1140_v20 = vadd.f32 %v1769_v26, %v1135_v21 }
 0x47d   :  { %1595 = vmatmul.msk.f32.gmra.mxu1 %vm168_vm2, %v1140_v20 }
 0x4ec   :  { %v1175_v5 = vpop.f32.mrf.mxu1 }
 0x4ed   :  { %v1176_v40 = vadd.f32 %v1770_v56, %v1175_v5 }
 0x4ef   :  { %1181 = vxpose.xlu2.b32.start [1/2] (short) (narrow) %v1176_v40, 8  ;;  %1215 = vrot.lane.b32.xlu1 %v1176_v40, %s1925_s5 }
 0x4f7   :  { %1289 = vperm.xlu1 %1757, %v1176_v40  }
 0x4fa   :  { %v1178_v17 = vpop.f32.mrf.mxu1 }
 0x4fb   :  { %v1179_v35 = vadd.f32 %v1770_v56, %v1178_v17 }
 0x4fd   :  { %1182 = vxpose.xlu2.b32.end [2/2] (short) (narrow) %v1179_v35, 8  ;;  %1217 = vrot.lane.b32.xlu0 %v1179_v35, %s1925_s5 }
 0x4fe   :  { %1411 = vmatpush.msra.mxu3 %v1179_v35 }
 0x4ff   :  { %1759 = vset.pattern.permute.xlu1 %v1926_v42 }
 0x500   :  { %1412 = vmatpush.msra.mxu3 %v1176_v40  ;;  %1327 = vperm.xlu1 %1759, %v1176_v40  }
 0x505   :  { %1308 = vperm.xlu0 %1758, %v1176_v40  }
 0x508   :  { %1761 = vset.pattern.permute.xlu1 %v1923_v10 }
 0x509   :  { %1293 = vperm.xlu1 %1761, %v1179_v35  }
 0x50d   :  { %1760 = vset.pattern.permute.xlu0 %v1927_v9 }
 0x50e   :  { %1346 = vperm.xlu0 %1760, %v1176_v40  }
 0x511   :  { %1762 = vset.pattern.permute.xlu1 %v1924_v58 }
 0x512   :  { %1312 = vperm.xlu1 %1762, %v1179_v35  }
 0x516   :  { %1764 = vset.pattern.permute.xlu0 %v3158_v37 }
 0x51a   :  { %1763 = vset.pattern.permute.xlu1 %v3158_v37 }
 0x55f   :  { %1766 = vset.pattern.permute.xlu2 %v1927_v9 }
 0x561   :  { %v1216_v3 = vpop.permute.xlu1 %1215 }
 0x562   :  { %1597 = vmatmul.msk.f32.vlgmr.msra.gmra.mxu2 %vm96_vm1, %v1216_v3 }
 0x566   :  { %1350 = vperm.xlu2 %1766, %v1179_v35  }
 0x569   :  { %v1290_v49 = vpop.permute.xlu1 %1289 }
 0x56f   :  { %v1218_v44 = vpop.permute.xlu0 %1217 }
 0x570   :  { %1598 = vmatmul.msk.f32.gmra.mxu2 %vm96_vm1, %v1218_v44 }
 0x572   :  { %v1328_v4 = vpop.permute.xlu1 %1327 }
 0x577   :  { %v1309_v8 = vpop.permute.xlu0 %1308 }
 0x57b   :  { %v1294_v28 = vpop.permute.xlu1 %1293 }
 0x580   :  { %v1347_v25 = vpop.permute.xlu0 %1346 }
 0x584   :  { %v1313_v47 = vpop.permute.xlu1 %1312 }
 0x58e   :  { %v1197_v59 = vpop.trf.xlu2 }
 0x58f   :  { %1599 = vmatpush.msk.msrb.mxu0 %vm103_vm0, %v1197_v59  ;;  %v1296_v51 = vperm.slane %v1197_v59, 0  ;;  %v1315_v43 = vperm.slane %v1197_v59, 1  ;;  %v1334_v45 = vperm.slane %v1197_v59, 2  ;;  %v1353_v16 = vperm.slane %v1197_v59, 3 }
 0x590   :  { %1600 = vmatmul.msk.f32.vlgmr.msrb.gmra.mxu0 %vm96_vm1, %v1147_v30 }
 0x591   :  { %v1297_v41 = vadd.f32 %v1296_v51, %v1290_v49  ;;  %v1316_v39 = vadd.f32 %v1315_v43, %v1309_v8  ;;  %v1335_v15 = vadd.f32 %v1334_v45, %v1328_v4  ;;  %v1354_v19 = vadd.f32 %v1353_v16, %v1347_v25 }
 0x592   :  { %v1298_v54 = vadd.f32 %v1296_v51, %v1294_v28  ;;  %v1317_v24 = vadd.f32 %v1315_v43, %v1313_v47 }
 0x593   :  { %v1300_v7 = vand.u32 2147483647, %v1297_v41  ;;  %v1319_v31 = vand.u32 2147483647, %v1316_v39  ;;  %v1338_v46 = vand.u32 2147483647, %v1335_v15 }
 0x594   :  { %v1357_v52 = vand.u32 2147483647, %v1354_v19  ;;  %v1301_v29 = vand.u32 2147483647, %v1298_v54  ;;  %v1320_v21 = vand.u32 2147483647, %v1317_v24 }
 0x595   :  { %v1303_v62 = vmul.f32 %v1302_v22, %v1300_v7  ;;  %v1322_v57 = vmul.f32 %v1321_v2, %v1319_v31  ;;  %v1341_v18 = vmul.f32 %v1340_v13, %v1338_v46 }
 0x596   :  { %v1360_v26 = vmul.f32 %v1359_v12, %v1357_v52  ;;  %v1304_v58 = vmul.f32 %v1302_v22, %v1301_v29  ;;  %v1323_v40 = vmul.f32 %v1321_v2, %v1320_v21 }
 0x5c0   :  { %v1351_v38 = vpop.permute.xlu2 %1350 }
 0x5c1   :  { %v1355_v61 = vadd.f32 %v1353_v16, %v1351_v38  ;;  %v1771_v16 = vld [vmem:[%s2999_s11] ss:$0 sm:$0xff] }
 0x5c3   :  { %v1358_v5 = vand.u32 2147483647, %v1355_v61 }
 0x5e5   :  { %v1243_v55 = vpop.f32.mrf.mxu2 }
 0x5e6   :  { %1277 = vperm.xlu1 %1763, %v1243_v55  }
 0x5ee   :  { %1765 = vset.pattern.permute.xlu1 %v1926_v42  ;;  %v1361_v42 = vmul.f32 %v1359_v12, %v1358_v5 }
 0x5ef   :  { %1331 = vperm.xlu1 %1765, %v1179_v35  }
 0x5f3   :  { %v1246_v27 = vpop.f32.mrf.mxu2 }
 0x5f4   :  { %1282 = vperm.xlu0 %1764, %v1246_v27  }
 0x5fc   :  { %1767 = vset.pattern.permute.xlu0 %v1927_v9 }
 0x60d   :  { %v1272_v32 = vpop.f32.mrf.mxu0 }
 0x60e   :  { %v1285_v33 = vperm.slane %v1272_v32, 0 }
 0x658   :  { %v1278_v53 = vpop.permute.xlu1 %1277 }
 0x659   :  { %v1286_v36 = vadd.f32 %v1285_v33, %v1278_v53 }
 0x65b   :  { %v1305_v50 = vadd.f32 %v1303_v62, %v1286_v36 }
 0x65d   :  { %v1324_v48 = vadd.f32 %v1322_v57, %v1305_v50 }
 0x65f   :  { %v1343_v14 = vadd.f32 %v1341_v18, %v1324_v48 }
 0x661   :  { %v1332_v0 = vpop.permute.xlu1 %1331  ;;  %v1362_v60 = vadd.f32 %v1360_v26, %v1343_v14 }
 0x662   :  { %v1336_v63 = vadd.f32 %v1334_v45, %v1332_v0 }
 0x663   :  { %v1364_v11 = vadd.f32 %v1362_v60, %v2762_v34 }
 0x664   :  { %v1339_v10 = vand.u32 2147483647, %v1336_v63 }
 0x665   :  { %v1366_v6 = vsel %vm386_vm3, %v1364_v11, -inf }
 0x666   :  { %1367 = vmax.xlane.f32.xlu1 %v1366_v6  ;;  %v1283_v20 = vpop.permute.xlu0 %1282  ;;  %v1342_v17 = vmul.f32 %v1340_v13, %v1339_v10 }
 0x667   :  { %v1287_v56 = vadd.f32 %v1285_v33, %v1283_v20 }
 0x669   :  { %v1306_v23 = vadd.f32 %v1304_v58, %v1287_v56 }
 0x66b   :  { %v1325_v35 = vadd.f32 %v1323_v40, %v1306_v23 }
 0x66d   :  { %v1344_v9 = vadd.f32 %v1342_v17, %v1325_v35 }
 0x66f   :  { %v1363_v37 = vadd.f32 %v1361_v42, %v1344_v9 }
 0x671   :  { %v1365_v34 = vadd.f32 %v1363_v37, %v2832_v1 }
 0x673   :  { %v1369_v3 = vsel %vm386_vm3, %v1365_v34, -inf }
 0x674   :  { %1370 = vmax.xlane.f32.xlu0 %v1369_v3 }
 0x6d9   :  { %v1368_v44 = vpop.xlane.xlu1 %1367 }
 0x6da   :  { %v1372_v59 = vsub.f32 %v1364_v11, %v1368_v44 }
 0x6dc   :  { %v1374_v30 = vmul.f32 1.442695, %v1372_v59 }
 0x6de   :  { %1804 = vpow2.f32 %v1374_v30 }
 0x6e4   :  { %v1805_v55 = vpop.eup %1804 }
 0x6e5   :  { %v1378_v27 = vsel %vm386_vm3, %v1805_v55, 0.0 }
 0x6e6   :  { %1379 = vadd.xlane.f32.xlu1 %v1378_v27 }
 0x6e7   :  { %v1371_v49 = vpop.xlane.xlu0 %1370 }
 0x6e8   :  { %v1373_v4 = vsub.f32 %v1365_v34, %v1371_v49 }
 0x6ea   :  { %v1376_v28 = vmul.f32 1.442695, %v1373_v4 }
 0x6ec   :  { %1806 = vpow2.f32 %v1376_v28 }
 0x6f2   :  { %v1807_v8 = vpop.eup %1806 }
 0x6f3   :  { %v1381_v51 = vsel %vm386_vm3, %v1807_v8, 0.0 }
 0x6f4   :  { %1382 = vadd.xlane.f32.xlu0 %v1381_v51 }
 0x759   :  { %v1380_v1 = vpop.xlane.xlu1 %1379 }
 0x75a   :  { %1808 = vrcp.f32 %v1380_v1 }
 0x760   :  { %v1809_v43 = vpop.eup %1808 }
 0x761   :  { %v1386_v47 = vmul.f32 %v1809_v43, %v1805_v55 }
 0x763   :  { %1604 = vmatmul.msk.f32.vlgmr.msra.gmra.mxu3 %vm386_vm3, %v1386_v47 }
 0x767   :  { %v1383_v41 = vpop.xlane.xlu0 %1382 }
 0x768   :  { %1810 = vrcp.f32 %v1383_v41 }
 0x76e   :  { %v1811_v45 = vpop.eup %1810 }
 0x76f   :  { %v1387_v32 = vmul.f32 %v1811_v45, %v1807_v8 }
 0x771   :  { %1605 = vmatmul.msk.f32.gmra.mxu3 %vm386_vm3, %v1387_v32 }
 0x7e6   :  { %v1414_v39 = vpop.f32.mrf.mxu3 }
 0x7e7   :  { %v1415_v33 = vadd.f32 %v1771_v16, %v1414_v39 }
 0x7e9   :  { %v1420_v7 = vmul.f32 %v1415_v33, %v1415_v33 }
 0x7eb   :  { %v1422_v15 = vsel %vm96_vm1, %v1420_v7, 0.0 }
 0x7ec   :  { %1423 = vadd.xlane.f32.xlu0 %v1422_v15 }
 0x7f4   :  { %v1417_v25 = vpop.f32.mrf.mxu3 }
 0x7f5   :  { %v1418_v22 = vadd.f32 %v1771_v16, %v1417_v25 }
 0x7f7   :  { %v1421_v19 = vmul.f32 %v1418_v22, %v1418_v22 }
 0x7f9   :  { %v1425_v31 = vsel %vm96_vm1, %v1421_v19, 0.0 }
 0x7fa   :  { %1426 = vadd.xlane.f32.xlu1 %v1425_v31 }
 0x85f   :  { %v1424_v2 = vpop.xlane.xlu0 %1423 }
 0x860   :  { %v1428_v53 = vmax.f32 %v1424_v2, 1e-24 }
 0x862   :  { %1812 = vrsqrt.f32 %v1428_v53  ;;  %vm1436_vm7 = vweird.f32 %v1428_v53 }
 0x868   :  { %v1813_v36 = vpop.eup %1812 }
 0x869   :  { %v1431_v62 = vmul.f32 %v1813_v36, %v1428_v53  ;;  %vm1437_vm6 = vweird.f32 %v1813_v36 }
 0x86a   :  { %vm1438_vm8 = vmor %vm1436_vm7, %vm1437_vm6 }
 0x86b   :  { %v1432_v46 = vmul.f32 %v1813_v36, %v1431_v62 }
 0x86d   :  { %v1433_v13 = vmul.f32 0.5, %v1432_v46  ;;  %v1427_v52 = vpop.xlane.xlu1 %1426 }
 0x86e   :  { %v1429_v50 = vmax.f32 %v1427_v52, 1e-24 }
 0x86f   :  { %v1434_v57 = vsub.f32 1.5, %v1433_v13 }
 0x870   :  { %1814 = vrsqrt.f32 %v1429_v50  ;;  %vm1446_vm10 = vweird.f32 %v1429_v50 }
 0x871   :  { %v1435_v12 = vmul.f32 %v1813_v36, %v1434_v57 }
 0x873   :  { %v1439_v48 = vsel %vm1438_vm8, %v1813_v36, %v1435_v12 }
 0x874   :  { %v1450_v18 = vmul.f32 %v1439_v48, %v1415_v33 }
 0x876   :  { %v1815_v26 = vpop.eup %1814  ;;  %1452 = vst.msk [vmem:[%s3159_s14] sm:$0xff] %vm96_vm1, %v1450_v18 }
 0x877   :  { %v1441_v14 = vmul.f32 %v1815_v26, %v1429_v50  ;;  %vm1447_vm9 = vweird.f32 %v1815_v26 }
 0x878   :  { %vm1448_vm11 = vmor %vm1446_vm10, %vm1447_vm9 }
 0x879   :  { %v1442_v54 = vmul.f32 %v1815_v26, %v1441_v14 }
 0x87b   :  { %v1443_v0 = vmul.f32 0.5, %v1442_v54 }
 0x87d   :  { %v1444_v60 = vsub.f32 1.5, %v1443_v0 }
 0x87f   :  { %v1445_v24 = vmul.f32 %v1815_v26, %v1444_v60 }
 0x881   :  { %v1449_v38 = vsel %vm1448_vm11, %v1815_v26, %v1445_v24 }
 0x882   :  { %v1451_v63 = vmul.f32 %v1449_v38, %v1418_v22 }
 0x884   :  { %1453 = vst.msk [vmem:[%s3159_s14 + $0x8] sm:$0xff] %vm96_vm1, %v1451_v63  ;;  %1606 = vmatpush.xpose.msk.msra.mxu1 %vm96_vm1, %v1451_v63 }
 0x888   :  { %1607 = vmatpush.xpose.msk.msra.mxu1 %vm96_vm1, %v1450_v18 }
 0x88b   :  { %1608 = vmatmul.msk.f32.vlgmr.msra.gmra.mxu1 %vm96_vm1, %v1450_v18 }
 0x893   :  { %1609 = vmatmul.msk.f32.gmra.mxu1 %vm96_vm1, %v1451_v63 }
 0x908   :  { %v1477_v11 = vpop.f32.mrf.mxu1 }
 0x909   :  { %v1610_v29 = vmul.f32 -1.442695, %v1477_v11 }
 0x90b   :  { %1816 = vpow2.f32 %v1610_v29 }
 0x910   :  { %v1480_v61 = vpop.f32.mrf.mxu1 }
 0x911   :  { %v1817_v6 = vpop.eup %1816  ;;  %v1611_v21 = vmul.f32 -1.442695, %v1480_v61 }
 0x912   :  { %v1489_v20 = vadd.f32 1.0, %v1817_v6 }
 0x913   :  { %1818 = vpow2.f32 %v1611_v21 }
 0x914   :  { %1820 = vrcp.f32 %v1489_v20  ;;  %v1502_v23 = vand.u32 2147483648, %v1489_v20  ;;  %v1500_v35 = vand.u32 2147483647, %v1489_v20  ;;  %vm1496_vm13 = vweird.f32 %v1489_v20 }
 0x916   :  { %v1503_v37 = vor.u32 1.1754944e-38, %v1502_v23  ;;  %vm1501_vm15 = vcmp.eq.f32.partialorder %v1500_v35, 8.507059e+37 }
 0x919   :  { %v1819_v10 = vpop.eup %1818 }
 0x91a   :  { %v1821_v58 = vpop.eup %1820  ;;  %v1490_v56 = vadd.f32 1.0, %v1819_v10 }
 0x91b   :  { %v1492_v5 = vmul.f32 %v1821_v58, %v1489_v20  ;;  %vm1497_vm12 = vweird.f32 %v1821_v58 }
 0x91c   :  { %1822 = vrcp.f32 %v1490_v56  ;;  %vm1498_vm14 = vmor %vm1496_vm13, %vm1497_vm12  ;;  %v1517_v30 = vand.u32 2147483648, %v1490_v56  ;;  %v1515_v27 = vand.u32 2147483647, %v1490_v56  ;;  %vm1511_vm1 = vweird.f32 %v1490_v56 }
 0x91d   :  { %v1493_v40 = vsub.f32 1.0, %v1492_v5 }
 0x91e   :  { %v1518_v4 = vor.u32 1.1754944e-38, %v1517_v30  ;;  %vm1516_vm4 = vcmp.eq.f32.partialorder %v1515_v27, 8.507059e+37 }
 0x91f   :  { %v1494_v17 = vmul.f32 %v1821_v58, %v1493_v40 }
 0x921   :  { %v1495_v42 = vadd.f32 %v1821_v58, %v1494_v17 }
 0x922   :  { %v1823_v9 = vpop.eup %1822 }
 0x923   :  { %v1507_v34 = vmul.f32 %v1823_v9, %v1490_v56  ;;  %v1499_v3 = vsel %vm1498_vm14, %v1821_v58, %v1495_v42  ;;  %vm1512_vm0 = vweird.f32 %v1823_v9 }
 0x924   :  { %v1504_v44 = vsel %vm1501_vm15, %v1503_v37, %v1499_v3  ;;  %vm1513_vm2 = vmor %vm1511_vm1, %vm1512_vm0 }
 0x925   :  { %v1508_v59 = vsub.f32 1.0, %v1507_v34  ;;  %1521 = vst.msk [vmem:[#allocation7] sm:$0xff] %vm386_vm3, %v1504_v44 }
 0x927   :  { %v1509_v55 = vmul.f32 %v1823_v9, %v1508_v59 }
 0x929   :  { %v1510_v49 = vadd.f32 %v1823_v9, %v1509_v55 }
 0x92b   :  { %v1514_v28 = vsel %vm1513_vm2, %v1823_v9, %v1510_v49 }
 0x92c   :  { %v1519_v8 = vsel %vm1516_vm4, %v1518_v4, %v1514_v28 }
 0x92d   :  { %1522 = vst.msk [vmem:[#allocation7 + $0x8] sm:$0xff] %vm386_vm3, %v1519_v8 }
 0x92e   :  { %1535 = dma.vmem_to_hbm [thread:$0]  %s1528_s19, 256, %s1530_s17, [#allocation3], %s1929_s20, %s1929_s20, %s1922_s3  }
 0x92f   :  { %1876 = dma.done.wait [#allocation3], 256  }
 0x930   :  { %1877 = vsyncadd [#allocation3], 4294967040 }
 0x931   :  { %1544 = vsyncpa [#allocation3], 1 }
 0x932   :  { %1545 = vsyncpa [#allocation4], 1 }
 0x933   :  { %1546 = vsyncpa [#allocation6], 1 }

</bundles_post_ra>
